<compile_context>
chip_gen: v7x
topology: tpu7x:2x2x1
jax: 0.10.0
libtpu: 0.0.40
codegen_flags: <defaults>
</compile_context>

<pallas_src>
import jax
import jax.numpy as jnp
from jax.experimental import pallas as pl
from jax.experimental.pallas import tpu as pltpu

SQRT1_2 = 0.7071067811865476
INV_2PI = 0.15915494309189535
LANE = 128

# 12-point Gauss-Legendre nodes / weights on [-1, 1] (only +/- pairs listed).
_GL_NODES = (0.1252334085114689, 0.3678314989981802, 0.5873179542866175,
             0.7699026741943047, 0.9041172563704749, 0.9815606342467192)
_GL_WEIGHTS = (0.2491470458134028, 0.2334925365383548, 0.2031674267230659,
               0.1600783285433462, 0.1069393259953184, 0.04717533638651183)

_NQ = 12
_OFF_T, _OFF_C, _OFF_H = 12, 24, 36  # offsets of quadrature scalars in params


def _erf(x):
    # Abramowitz & Stegun 7.1.26 (elementwise: VPU + EUP only).
    a1, a2, a3, a4, a5 = 0.254829592, -0.284496736, 1.421413741, -1.453152027, 1.061405429
    p = 0.3275911
    sgn = jnp.where(x >= 0.0, 1.0, -1.0)
    ax = jnp.abs(x)
    # approx reciprocal: pushes the divide to the (otherwise idle) EUP slot.
    t = pl.reciprocal(1.0 + p * ax, approx=True)
    poly = ((((a5 * t + a4) * t + a3) * t + a2) * t + a1) * t
    return sgn * (1.0 - poly * jnp.exp(-ax * ax))


def _norm_cdf(x):
    return 0.5 * (1.0 + _erf(x * SQRT1_2))


def _norm_ppf(p):
    # Acklam's rational approximation to the standard-normal inverse CDF.
    # Lower/upper tails are mirror images -> evaluate the tail rational once
    # on min(p, 1-p) and flip the sign (saves 1 log, 1 sqrt, ~9 FMAs, 1 recip).
    a = (-3.969683028665376e+01, 2.209460984245205e+02, -2.759285104469687e+02,
         1.383577518672690e+02, -3.066479806614716e+01, 2.506628277459239e+00)
    b = (-5.447609879822406e+01, 1.615858368580409e+02, -1.556989798598866e+02,
         6.680131188771972e+01, -1.328068155288572e+01)
    c = (-7.784894002430293e-03, -3.223964580411365e-01, -2.400758277161838e+00,
         -2.549732539343734e+00, 4.374664141464968e+00, 2.938163982698783e+00)
    d = (7.784695709041462e-03, 3.224671290700398e-01, 2.445134137142996e+00,
         3.754408661907416e+00)
    eps = 1e-7
    p = jnp.clip(p, eps, 1.0 - eps)
    plow = 0.02425

    # central branch
    q = p - 0.5
    r = q * q
    num_c = (((((a[0] * r + a[1]) * r + a[2]) * r + a[3]) * r + a[4]) * r + a[5]) * q
    den_c = ((((b[0] * r + b[1]) * r + b[2]) * r + b[3]) * r + b[4]) * r + 1.0
    x_cent = num_c * pl.reciprocal(den_c, approx=True)

    # shared tail branch
    pt = jnp.minimum(p, 1.0 - p)
    qt = jnp.sqrt(-2.0 * jnp.log(pt))
    num_t = ((((c[0] * qt + c[1]) * qt + c[2]) * qt + c[3]) * qt + c[4]) * qt + c[5]
    den_t = (((d[0] * qt + d[1]) * qt + d[2]) * qt + d[3]) * qt + 1.0
    x_tail = num_t * pl.reciprocal(den_t, approx=True)
    x_tail = jnp.where(p < 0.5, x_tail, -x_tail)

    in_tail = jnp.abs(q) > (0.5 - plow)
    return jnp.where(in_tail, x_tail, x_cent)


def _loss_kernel(params_ref, n_ref, data_ref, out_ref):
    # params (SMEM f32[64]):
    #  [0] 1/sigma1   [1] 1/sigma2
    #  [2] A11  [3] A12+A21  [4] A22            A = gamma12^{-1}
    #  [5..8]  M row-major                      M = gamma3412 @ gamma12^{-1}
    #  [9] 1/sqrt(gstar11)  [10] 1/sqrt(gstar22)  [11] rho/(2*pi)
    #  [12..23] 2*t_j*h_j   [24..35] c_j        [36..47] h_j   (quadrature)
    # n_ref (SMEM i32[1]): number of valid samples.
    # data block (VMEM f32[8, TILE_R, 128]), channels:
    #  0 p3, 1 cont-pred-1, 2 p4, 3 cont-pred-2,
    #  4 label3, 5 cont-true-1, 6 label4, 7 cont-true-2.
    inv_s1 = params_ref[0]
    inv_s2 = params_ref[1]
    a11 = params_ref[2]
    a12p21 = params_ref[3]
    a22 = params_ref[4]
    m11 = params_ref[5]
    m12 = params_ref[6]
    m21 = params_ref[7]
    m22 = params_ref[8]
    inv_sg1 = params_ref[9]
    inv_sg2 = params_ref[10]
    rho_2pi = params_ref[11]
    # Hoist quadrature scalar loads out of the quadrature loop.
    two_t_h = [params_ref[_OFF_T + j] for j in range(_NQ)]
    coef_q = [params_ref[_OFF_C + j] for j in range(_NQ)]
    half_q = [params_ref[_OFF_H + j] for j in range(_NQ)]

    p3 = data_ref[0]          # (TILE_R, 128) lane-dense tiles
    yh1 = data_ref[1]
    p4 = data_ref[2]
    yh2 = data_ref[3]
    l3 = data_ref[4]
    yt1 = data_ref[5]
    l4 = data_ref[6]
    yt2 = data_ref[7]

    # standardized continuous residuals (phi_inv_u1 / phi_inv_u2)
    q1 = (yt1 - yh1) * inv_s1
    q2 = (yt2 - yh2) * inv_s2

    # q12' gamma12^{-1} q12  and  miu_star = M q12
    quad = a11 * q1 * q1 + a12p21 * q1 * q2 + a22 * q2 * q2
    mu1 = m11 * q1 + m12 * q2
    mu2 = m21 * q1 + m22 * q2

    # Binary-label dedup: for labels in {0,1} exactly one of {CDF3, CDF3_ll}
    # is the non-degenerate value 1-p3 (the other is 0 or 1), and likewise for
    # 4.  Only the non-degenerate marginals ever need ppf / Phi / quadrature.
    u3 = 1.0 - p3
    u4 = 1.0 - p4
    h = (_norm_ppf(u3) - mu1) * inv_sg1
    k = (_norm_ppf(u4) - mu2) * inv_sg2
    Ph = _norm_cdf(h)
    Pk = _norm_cdf(k)

    # Single standard bivariate normal CDF with correlation rho:
    # Phi(h)Phi(k) + 1/(2pi) int_0^rho exp(-(h^2-2hkt+k^2)/(2(1-t^2)))/sqrt(1-t^2) dt
    hs = h * h + k * k
    hk = h * k
    acc = coef_q[0] * jnp.exp(hk * two_t_h[0] - hs * half_q[0])
    for j in range(1, _NQ):
        acc = acc + coef_q[j] * jnp.exp(hk * two_t_h[j] - hs * half_q[j])
    biv = Ph * Pk + rho_2pi * acc

    # Assemble C = C1 - C2 - C3 + C4 from label-selected shortcut terms.
    #   (l3,l4)=(1,1): C = biv - Ph - Pk + 1
    #   (l3,l4)=(1,0): C = Pk - biv
    #   (l3,l4)=(0,1): C = Ph - biv
    #   (l3,l4)=(0,0): C = biv
    s3 = l3 >= 0.5
    s4 = l4 >= 0.5
    offset = jnp.where(s3,
                       jnp.where(s4, 1.0 - Ph - Pk, Pk),
                       jnp.where(s4, Ph, 0.0))
    C = offset + jnp.where(jnp.logical_xor(s3, s4), -biv, biv)

    # Clamp before log: C is a (rearranged) difference of CDF terms and can
    # round <= 0.
    log_xxx = -0.5 * quad + jnp.log(jnp.maximum(C, 1e-30))

    # In-kernel validity mask from the flattened sample index (no mask channel).
    tile_r = data_ref.shape[1]
    base = pl.program_id(0) * (tile_r * LANE)
    row = jax.lax.broadcasted_iota(jnp.int32, (tile_r, LANE), 0)
    col = jax.lax.broadcasted_iota(jnp.int32, (tile_r, LANE), 1)
    valid = (base + row * LANE + col) < n_ref[0]
    masked = jnp.where(valid, log_xxx, 0.0)

    # Sublane-sum the masked partial to a single lane-dense (8,128) block per
    # tile (pairwise tree of elementwise adds; pure VALU, store slot relieved).
    parts = [masked[8 * j:8 * (j + 1), :] for j in range(tile_r // 8)]
    while len(parts) > 1:
        nxt = [parts[a] + parts[a + 1] for a in range(0, len(parts) - 1, 2)]
        if len(parts) % 2:
            nxt.append(parts[-1])
        parts = nxt
    out_ref[...] = parts[0]


def _round_up(x, m):
    return (x + m - 1) // m * m


def parametric_loss(y_hat, y, gamma12, gamma34, gamma3412, sigma1, sigma2,
                    *, max_tile_rows=512):
    f32 = jnp.float32
    y_hat = jnp.asarray(y_hat, f32)
    y = jnp.asarray(y, f32)
    gamma12 = jnp.asarray(gamma12, f32)
    gamma34 = jnp.asarray(gamma34, f32)
    gamma3412 = jnp.asarray(gamma3412, f32)
    sigma1 = jnp.asarray(sigma1, f32).reshape(())
    sigma2 = jnp.asarray(sigma2, f32).reshape(())

    # --- glue: tiny 2x2 linear algebra + quadrature constants (plain JAX) ---
    gamma12_inv = jnp.linalg.inv(gamma12)
    gamma_star = gamma34 - gamma3412 @ (gamma12_inv @ gamma3412.T)
    M = gamma3412 @ gamma12_inv
    sg1 = jnp.sqrt(gamma_star[0, 0])
    sg2 = jnp.sqrt(gamma_star[1, 1])
    rho = gamma_star[0, 1] / (sg1 * sg2)

    nodes, weights = [], []
    for xi, wi in zip(_GL_NODES, _GL_WEIGHTS):
        for s in (1.0, -1.0):
            nodes.append(0.5 * (1.0 + s * xi))
            weights.append(0.5 * wi)
    nodes = jnp.asarray(nodes, f32)
    weights = jnp.asarray(weights, f32)
    t = rho * nodes
    one_m_t2 = 1.0 - t * t
    coef = weights / jnp.sqrt(one_m_t2)
    half_inv = 0.5 / one_m_t2
    two_t_h = 2.0 * t * half_inv            # pre-folded 2*t_j*h_j

    params = jnp.zeros((64,), f32)
    params = params.at[0].set(1.0 / sigma1)
    params = params.at[1].set(1.0 / sigma2)
    params = params.at[2].set(gamma12_inv[0, 0])
    params = params.at[3].set(gamma12_inv[0, 1] + gamma12_inv[1, 0])
    params = params.at[4].set(gamma12_inv[1, 1])
    params = params.at[5].set(M[0, 0])
    params = params.at[6].set(M[0, 1])
    params = params.at[7].set(M[1, 0])
    params = params.at[8].set(M[1, 1])
    params = params.at[9].set(1.0 / sg1)
    params = params.at[10].set(1.0 / sg2)
    params = params.at[11].set(rho * INV_2PI)
    params = params.at[12:24].set(two_t_h)
    params = params.at[24:36].set(coef)
    params = params.at[36:48].set(half_inv)

    # --- lane-dense packing of the 8 channels ------------------------------
    n = y_hat.shape[1]
    r_needed = max(1, -(-n // LANE))
    # Keep >= 2 grid steps whenever possible so the "parallel" axis actually
    # shards across both TensorCores on v7x; cap tile size for VMEM headroom.
    half_rows = _round_up(max(1, -(-r_needed // 2)), 8)
    tile_r = min(_round_up(max_tile_rows, 8), max(8, half_rows))
    r_pad = _round_up(r_needed, tile_r)
    num_tiles = r_pad // tile_r
    n_pad = r_pad * LANE
    pad = n_pad - n

    def chan(v, fill):
        return jnp.pad(v, (0, pad), constant_values=fill).reshape(r_pad, LANE)

    # Padded samples get benign values (p=0.5, label=1, residual=0) and are
    # masked out inside the kernel via the iota/n mask.
    data = jnp.stack([
        chan(y_hat[0], 0.5),               # p3
        chan(y_hat[1], 0.0),               # continuous prediction 1
        chan(y_hat[2], 0.5),               # p4
        chan(y_hat[3], 0.0),               # continuous prediction 2
        chan(y[0], 1.0),                   # label3
        chan(y[1], 0.0),                   # continuous target 1
        chan(y[2], 1.0),                   # label4
        chan(y[3], 0.0),                   # continuous target 2
    ], axis=0)                             # (8, r_pad, 128)

    n_arr = jnp.asarray([n], jnp.int32)

    partials = pl.pallas_call(
        _loss_kernel,
        out_shape=jax.ShapeDtypeStruct((num_tiles * 8, LANE), f32),
        grid=(num_tiles,),
        in_specs=[
            pl.BlockSpec(memory_space=pltpu.MemorySpace.SMEM),      # params
            pl.BlockSpec(memory_space=pltpu.MemorySpace.SMEM),      # n valid
            pl.BlockSpec((8, tile_r, LANE), lambda i: (0, i, 0)),   # packed data
        ],
        out_specs=pl.BlockSpec((8, LANE), lambda i: (i, 0)),
        compiler_params=pltpu.CompilerParams(
            dimension_semantics=("parallel",),      # megacore sharding on v7x
            vmem_limit_bytes=32 * 1024 * 1024),
    )(params, n_arr, data)

    return -jnp.sum(partials)


if __name__ == "__main__":
    key = jax.random.PRNGKey(0)
    k1, k2, k3, k4 = jax.random.split(key, 4)
    N = 8  # number of samples (columns)

    # Deterministic synthetic inputs consistent with the module's forward.
    p_left = jax.nn.sigmoid(jax.random.normal(k1, (N,)))
    p_right = jax.nn.sigmoid(jax.random.normal(k2, (N,)))
    cont_pred = 0.5 * jax.random.normal(k3, (2, N))
    y_hat = jnp.stack([p_left, cont_pred[0], p_right, cont_pred[1]], axis=0)

    labels = (jax.random.uniform(k4, (2, N)) < 0.5).astype(jnp.float32)
    cont_true = cont_pred + 0.3 * jax.random.normal(jax.random.PRNGKey(1), (2, N))
    y = jnp.stack([labels[0], cont_true[0], labels[1], cont_true[1]], axis=0)

    # Blocks of a valid 4x4 latent covariance (deterministic "parameters").
    gamma12 = jnp.array([[1.0, 0.3], [0.3, 1.0]], jnp.float32)
    gamma34 = jnp.array([[1.0, 0.4], [0.4, 1.0]], jnp.float32)
    gamma3412 = jnp.array([[0.20, 0.10], [0.15, 0.25]], jnp.float32)
    sigma1 = jnp.float32(0.8)
    sigma2 = jnp.float32(1.2)

    loss = parametric_loss(y_hat, y, gamma12, gamma34, gamma3412, sigma1, sigma2)
    loss = jax.block_until_ready(loss)
    assert bool(jnp.isfinite(loss)), f"loss is not finite: {loss}"
    print("KERNEL_OK")
</pallas_src>

<mosaic_0001>
module attributes {stable_mosaic.version = 11 : i64} {
  func.func @_loss_kernel(%arg0: i32, %arg1: memref<64xf32, #tpu.memory_space<smem>>, %arg2: memref<1xi32, #tpu.memory_space<smem>>, %arg3: memref<8x8x128xf32, #tpu.memory_space<vmem>>, %arg4: memref<8x128xf32, #tpu.memory_space<vmem>>) attributes {dimension_semantics = [#tpu.dimension_semantics<parallel>], iteration_bounds = array<i64: 1>, scalar_prefetch = 0 : i64, scratch_operands = 0 : i64, tpu.core_type = #tpu.core_type<tc>, window_params = [{transform_indices = @transform_0, window_bounds = array<i64: 64>}, {transform_indices = @transform_1, window_bounds = array<i64: 1>}, {transform_indices = @transform_2, window_bounds = array<i64: 8, 8, 128>}, {transform_indices = @transform_3, window_bounds = array<i64: 8, 128>}]} {
    %c0 = arith.constant 0 : index
    %0 = memref.load %arg1[%c0] : memref<64xf32, #tpu.memory_space<smem>>
    %c1 = arith.constant 1 : index
    %1 = memref.load %arg1[%c1] : memref<64xf32, #tpu.memory_space<smem>>
    %c2 = arith.constant 2 : index
    %2 = memref.load %arg1[%c2] : memref<64xf32, #tpu.memory_space<smem>>
    %c3 = arith.constant 3 : index
    %3 = memref.load %arg1[%c3] : memref<64xf32, #tpu.memory_space<smem>>
    %c4 = arith.constant 4 : index
    %4 = memref.load %arg1[%c4] : memref<64xf32, #tpu.memory_space<smem>>
    %c5 = arith.constant 5 : index
    %5 = memref.load %arg1[%c5] : memref<64xf32, #tpu.memory_space<smem>>
    %c6 = arith.constant 6 : index
    %6 = memref.load %arg1[%c6] : memref<64xf32, #tpu.memory_space<smem>>
    %c7 = arith.constant 7 : index
    %7 = memref.load %arg1[%c7] : memref<64xf32, #tpu.memory_space<smem>>
    %c8 = arith.constant 8 : index
    %8 = memref.load %arg1[%c8] : memref<64xf32, #tpu.memory_space<smem>>
    %c9 = arith.constant 9 : index
    %9 = memref.load %arg1[%c9] : memref<64xf32, #tpu.memory_space<smem>>
    %c10 = arith.constant 10 : index
    %10 = memref.load %arg1[%c10] : memref<64xf32, #tpu.memory_space<smem>>
    %c11 = arith.constant 11 : index
    %11 = memref.load %arg1[%c11] : memref<64xf32, #tpu.memory_space<smem>>
    %c12 = arith.constant 12 : index
    %12 = memref.load %arg1[%c12] : memref<64xf32, #tpu.memory_space<smem>>
    %c13 = arith.constant 13 : index
    %13 = memref.load %arg1[%c13] : memref<64xf32, #tpu.memory_space<smem>>
    %c14 = arith.constant 14 : index
    %14 = memref.load %arg1[%c14] : memref<64xf32, #tpu.memory_space<smem>>
    %c15 = arith.constant 15 : index
    %15 = memref.load %arg1[%c15] : memref<64xf32, #tpu.memory_space<smem>>
    %c16 = arith.constant 16 : index
    %16 = memref.load %arg1[%c16] : memref<64xf32, #tpu.memory_space<smem>>
    %c17 = arith.constant 17 : index
    %17 = memref.load %arg1[%c17] : memref<64xf32, #tpu.memory_space<smem>>
    %c18 = arith.constant 18 : index
    %18 = memref.load %arg1[%c18] : memref<64xf32, #tpu.memory_space<smem>>
    %c19 = arith.constant 19 : index
    %19 = memref.load %arg1[%c19] : memref<64xf32, #tpu.memory_space<smem>>
    %c20 = arith.constant 20 : index
    %20 = memref.load %arg1[%c20] : memref<64xf32, #tpu.memory_space<smem>>
    %c21 = arith.constant 21 : index
    %21 = memref.load %arg1[%c21] : memref<64xf32, #tpu.memory_space<smem>>
    %c22 = arith.constant 22 : index
    %22 = memref.load %arg1[%c22] : memref<64xf32, #tpu.memory_space<smem>>
    %c23 = arith.constant 23 : index
    %23 = memref.load %arg1[%c23] : memref<64xf32, #tpu.memory_space<smem>>
    %c24 = arith.constant 24 : index
    %24 = memref.load %arg1[%c24] : memref<64xf32, #tpu.memory_space<smem>>
    %c25 = arith.constant 25 : index
    %25 = memref.load %arg1[%c25] : memref<64xf32, #tpu.memory_space<smem>>
    %c26 = arith.constant 26 : index
    %26 = memref.load %arg1[%c26] : memref<64xf32, #tpu.memory_space<smem>>
    %c27 = arith.constant 27 : index
    %27 = memref.load %arg1[%c27] : memref<64xf32, #tpu.memory_space<smem>>
    %c28 = arith.constant 28 : index
    %28 = memref.load %arg1[%c28] : memref<64xf32, #tpu.memory_space<smem>>
    %c29 = arith.constant 29 : index
    %29 = memref.load %arg1[%c29] : memref<64xf32, #tpu.memory_space<smem>>
    %c30 = arith.constant 30 : index
    %30 = memref.load %arg1[%c30] : memref<64xf32, #tpu.memory_space<smem>>
    %c31 = arith.constant 31 : index
    %31 = memref.load %arg1[%c31] : memref<64xf32, #tpu.memory_space<smem>>
    %c32 = arith.constant 32 : index
    %32 = memref.load %arg1[%c32] : memref<64xf32, #tpu.memory_space<smem>>
    %c33 = arith.constant 33 : index
    %33 = memref.load %arg1[%c33] : memref<64xf32, #tpu.memory_space<smem>>
    %c34 = arith.constant 34 : index
    %34 = memref.load %arg1[%c34] : memref<64xf32, #tpu.memory_space<smem>>
    %c35 = arith.constant 35 : index
    %35 = memref.load %arg1[%c35] : memref<64xf32, #tpu.memory_space<smem>>
    %c36 = arith.constant 36 : index
    %36 = memref.load %arg1[%c36] : memref<64xf32, #tpu.memory_space<smem>>
    %c37 = arith.constant 37 : index
    %37 = memref.load %arg1[%c37] : memref<64xf32, #tpu.memory_space<smem>>
    %c38 = arith.constant 38 : index
    %38 = memref.load %arg1[%c38] : memref<64xf32, #tpu.memory_space<smem>>
    %c39 = arith.constant 39 : index
    %39 = memref.load %arg1[%c39] : memref<64xf32, #tpu.memory_space<smem>>
    %c40 = arith.constant 40 : index
    %40 = memref.load %arg1[%c40] : memref<64xf32, #tpu.memory_space<smem>>
    %c41 = arith.constant 41 : index
    %41 = memref.load %arg1[%c41] : memref<64xf32, #tpu.memory_space<smem>>
    %c42 = arith.constant 42 : index
    %42 = memref.load %arg1[%c42] : memref<64xf32, #tpu.memory_space<smem>>
    %c43 = arith.constant 43 : index
    %43 = memref.load %arg1[%c43] : memref<64xf32, #tpu.memory_space<smem>>
    %c44 = arith.constant 44 : index
    %44 = memref.load %arg1[%c44] : memref<64xf32, #tpu.memory_space<smem>>
    %c45 = arith.constant 45 : index
    %45 = memref.load %arg1[%c45] : memref<64xf32, #tpu.memory_space<smem>>
    %c46 = arith.constant 46 : index
    %46 = memref.load %arg1[%c46] : memref<64xf32, #tpu.memory_space<smem>>
    %c47 = arith.constant 47 : index
    %47 = memref.load %arg1[%c47] : memref<64xf32, #tpu.memory_space<smem>>
    %c0_0 = arith.constant 0 : index
    %c0_1 = arith.constant 0 : index
    %c0_2 = arith.constant 0 : index
    %48 = vector.load %arg3[%c0_0, %c0_1, %c0_2] : memref<8x8x128xf32, #tpu.memory_space<vmem>>, vector<1x8x128xf32>
    %49 = vector.shape_cast %48 : vector<1x8x128xf32> to vector<8x128xf32>
    %c1_3 = arith.constant 1 : index
    %c0_4 = arith.constant 0 : index
    %c0_5 = arith.constant 0 : index
    %50 = vector.load %arg3[%c1_3, %c0_4, %c0_5] : memref<8x8x128xf32, #tpu.memory_space<vmem>>, vector<1x8x128xf32>
    %51 = vector.shape_cast %50 : vector<1x8x128xf32> to vector<8x128xf32>
    %c2_6 = arith.constant 2 : index
    %c0_7 = arith.constant 0 : index
    %c0_8 = arith.constant 0 : index
    %52 = vector.load %arg3[%c2_6, %c0_7, %c0_8] : memref<8x8x128xf32, #tpu.memory_space<vmem>>, vector<1x8x128xf32>
    %53 = vector.shape_cast %52 : vector<1x8x128xf32> to vector<8x128xf32>
    %c3_9 = arith.constant 3 : index
    %c0_10 = arith.constant 0 : index
    %c0_11 = arith.constant 0 : index
    %54 = vector.load %arg3[%c3_9, %c0_10, %c0_11] : memref<8x8x128xf32, #tpu.memory_space<vmem>>, vector<1x8x128xf32>
    %55 = vector.shape_cast %54 : vector<1x8x128xf32> to vector<8x128xf32>
    %c4_12 = arith.constant 4 : index
    %c0_13 = arith.constant 0 : index
    %c0_14 = arith.constant 0 : index
    %56 = vector.load %arg3[%c4_12, %c0_13, %c0_14] : memref<8x8x128xf32, #tpu.memory_space<vmem>>, vector<1x8x128xf32>
    %57 = vector.shape_cast %56 : vector<1x8x128xf32> to vector<8x128xf32>
    %c5_15 = arith.constant 5 : index
    %c0_16 = arith.constant 0 : index
    %c0_17 = arith.constant 0 : index
    %58 = vector.load %arg3[%c5_15, %c0_16, %c0_17] : memref<8x8x128xf32, #tpu.memory_space<vmem>>, vector<1x8x128xf32>
    %59 = vector.shape_cast %58 : vector<1x8x128xf32> to vector<8x128xf32>
    %c6_18 = arith.constant 6 : index
    %c0_19 = arith.constant 0 : index
    %c0_20 = arith.constant 0 : index
    %60 = vector.load %arg3[%c6_18, %c0_19, %c0_20] : memref<8x8x128xf32, #tpu.memory_space<vmem>>, vector<1x8x128xf32>
    %61 = vector.shape_cast %60 : vector<1x8x128xf32> to vector<8x128xf32>
    %c7_21 = arith.constant 7 : index
    %c0_22 = arith.constant 0 : index
    %c0_23 = arith.constant 0 : index
    %62 = vector.load %arg3[%c7_21, %c0_22, %c0_23] : memref<8x8x128xf32, #tpu.memory_space<vmem>>, vector<1x8x128xf32>
    %63 = vector.shape_cast %62 : vector<1x8x128xf32> to vector<8x128xf32>
    %64 = arith.subf %59, %51 : vector<8x128xf32>
    %65 = vector.broadcast %0 : f32 to vector<8x128xf32>
    %66 = arith.mulf %64, %65 : vector<8x128xf32>
    %67 = arith.subf %63, %55 : vector<8x128xf32>
    %68 = vector.broadcast %1 : f32 to vector<8x128xf32>
    %69 = arith.mulf %67, %68 : vector<8x128xf32>
    %70 = vector.broadcast %2 : f32 to vector<8x128xf32>
    %71 = arith.mulf %70, %66 : vector<8x128xf32>
    %72 = arith.mulf %71, %66 : vector<8x128xf32>
    %73 = vector.broadcast %3 : f32 to vector<8x128xf32>
    %74 = arith.mulf %73, %66 : vector<8x128xf32>
    %75 = arith.mulf %74, %69 : vector<8x128xf32>
    %76 = arith.addf %72, %75 : vector<8x128xf32>
    %77 = vector.broadcast %4 : f32 to vector<8x128xf32>
    %78 = arith.mulf %77, %69 : vector<8x128xf32>
    %79 = arith.mulf %78, %69 : vector<8x128xf32>
    %80 = arith.addf %76, %79 : vector<8x128xf32>
    %81 = vector.broadcast %5 : f32 to vector<8x128xf32>
    %82 = arith.mulf %81, %66 : vector<8x128xf32>
    %83 = vector.broadcast %6 : f32 to vector<8x128xf32>
    %84 = arith.mulf %83, %69 : vector<8x128xf32>
    %85 = arith.addf %82, %84 : vector<8x128xf32>
    %86 = vector.broadcast %7 : f32 to vector<8x128xf32>
    %87 = arith.mulf %86, %66 : vector<8x128xf32>
    %88 = vector.broadcast %8 : f32 to vector<8x128xf32>
    %89 = arith.mulf %88, %69 : vector<8x128xf32>
    %90 = arith.addf %87, %89 : vector<8x128xf32>
    %cst = arith.constant 1.000000e+00 : f32
    %91 = vector.broadcast %cst : f32 to vector<8x128xf32>
    %92 = arith.subf %91, %49 : vector<8x128xf32>
    %cst_24 = arith.constant 1.000000e+00 : f32
    %93 = vector.broadcast %cst_24 : f32 to vector<8x128xf32>
    %94 = arith.subf %93, %53 : vector<8x128xf32>
    %cst_25 = arith.constant 1.000000e-07 : f32
    %cst_26 = arith.constant 0.99999988 : f32
    %95 = vector.broadcast %cst_25 : f32 to vector<8x128xf32>
    %96 = arith.maximumf %95, %92 : vector<8x128xf32>
    %97 = vector.broadcast %cst_26 : f32 to vector<8x128xf32>
    %98 = arith.minimumf %97, %96 : vector<8x128xf32>
    %cst_27 = arith.constant 5.000000e-01 : f32
    %99 = vector.broadcast %cst_27 : f32 to vector<8x128xf32>
    %100 = arith.subf %98, %99 : vector<8x128xf32>
    %101 = arith.mulf %100, %100 : vector<8x128xf32>
    %cst_28 = arith.constant -39.6968307 : f32
    %102 = vector.broadcast %cst_28 : f32 to vector<8x128xf32>
    %103 = arith.mulf %102, %101 : vector<8x128xf32>
    %cst_29 = arith.constant 220.946106 : f32
    %104 = vector.broadcast %cst_29 : f32 to vector<8x128xf32>
    %105 = arith.addf %103, %104 : vector<8x128xf32>
    %106 = arith.mulf %105, %101 : vector<8x128xf32>
    %cst_30 = arith.constant -275.928497 : f32
    %107 = vector.broadcast %cst_30 : f32 to vector<8x128xf32>
    %108 = arith.addf %106, %107 : vector<8x128xf32>
    %109 = arith.mulf %108, %101 : vector<8x128xf32>
    %cst_31 = arith.constant 138.357758 : f32
    %110 = vector.broadcast %cst_31 : f32 to vector<8x128xf32>
    %111 = arith.addf %109, %110 : vector<8x128xf32>
    %112 = arith.mulf %111, %101 : vector<8x128xf32>
    %cst_32 = arith.constant -30.6647987 : f32
    %113 = vector.broadcast %cst_32 : f32 to vector<8x128xf32>
    %114 = arith.addf %112, %113 : vector<8x128xf32>
    %115 = arith.mulf %114, %101 : vector<8x128xf32>
    %cst_33 = arith.constant 2.50662827 : f32
    %116 = vector.broadcast %cst_33 : f32 to vector<8x128xf32>
    %117 = arith.addf %115, %116 : vector<8x128xf32>
    %118 = arith.mulf %117, %100 : vector<8x128xf32>
    %cst_34 = arith.constant -54.4760971 : f32
    %119 = vector.broadcast %cst_34 : f32 to vector<8x128xf32>
    %120 = arith.mulf %119, %101 : vector<8x128xf32>
    %cst_35 = arith.constant 161.585831 : f32
    %121 = vector.broadcast %cst_35 : f32 to vector<8x128xf32>
    %122 = arith.addf %120, %121 : vector<8x128xf32>
    %123 = arith.mulf %122, %101 : vector<8x128xf32>
    %cst_36 = arith.constant -155.698975 : f32
    %124 = vector.broadcast %cst_36 : f32 to vector<8x128xf32>
    %125 = arith.addf %123, %124 : vector<8x128xf32>
    %126 = arith.mulf %125, %101 : vector<8x128xf32>
    %cst_37 = arith.constant 66.8013153 : f32
    %127 = vector.broadcast %cst_37 : f32 to vector<8x128xf32>
    %128 = arith.addf %126, %127 : vector<8x128xf32>
    %129 = arith.mulf %128, %101 : vector<8x128xf32>
    %cst_38 = arith.constant -13.2806816 : f32
    %130 = vector.broadcast %cst_38 : f32 to vector<8x128xf32>
    %131 = arith.addf %129, %130 : vector<8x128xf32>
    %132 = arith.mulf %131, %101 : vector<8x128xf32>
    %cst_39 = arith.constant 1.000000e+00 : f32
    %133 = vector.broadcast %cst_39 : f32 to vector<8x128xf32>
    %134 = arith.addf %132, %133 : vector<8x128xf32>
    %135 = tpu.reciprocal %134 {approx = true} : vector<8x128xf32> -> vector<8x128xf32>
    %136 = arith.mulf %118, %135 : vector<8x128xf32>
    %cst_40 = arith.constant 1.000000e+00 : f32
    %137 = vector.broadcast %cst_40 : f32 to vector<8x128xf32>
    %138 = arith.subf %137, %98 : vector<8x128xf32>
    %139 = arith.minimumf %98, %138 : vector<8x128xf32>
    %140 = math.log %139 : vector<8x128xf32>
    %cst_41 = arith.constant -2.000000e+00 : f32
    %141 = vector.broadcast %cst_41 : f32 to vector<8x128xf32>
    %142 = arith.mulf %141, %140 : vector<8x128xf32>
    %143 = math.sqrt %142 : vector<8x128xf32>
    %cst_42 = arith.constant -0.0077848942 : f32
    %144 = vector.broadcast %cst_42 : f32 to vector<8x128xf32>
    %145 = arith.mulf %144, %143 : vector<8x128xf32>
    %cst_43 = arith.constant -0.322396457 : f32
    %146 = vector.broadcast %cst_43 : f32 to vector<8x128xf32>
    %147 = arith.addf %145, %146 : vector<8x128xf32>
    %148 = arith.mulf %147, %143 : vector<8x128xf32>
    %cst_44 = arith.constant -2.40075827 : f32
    %149 = vector.broadcast %cst_44 : f32 to vector<8x128xf32>
    %150 = arith.addf %148, %149 : vector<8x128xf32>
    %151 = arith.mulf %150, %143 : vector<8x128xf32>
    %cst_45 = arith.constant -2.54973245 : f32
    %152 = vector.broadcast %cst_45 : f32 to vector<8x128xf32>
    %153 = arith.addf %151, %152 : vector<8x128xf32>
    %154 = arith.mulf %153, %143 : vector<8x128xf32>
    %cst_46 = arith.constant 4.37466431 : f32
    %155 = vector.broadcast %cst_46 : f32 to vector<8x128xf32>
    %156 = arith.addf %154, %155 : vector<8x128xf32>
    %157 = arith.mulf %156, %143 : vector<8x128xf32>
    %cst_47 = arith.constant 2.938164 : f32
    %158 = vector.broadcast %cst_47 : f32 to vector<8x128xf32>
    %159 = arith.addf %157, %158 : vector<8x128xf32>
    %cst_48 = arith.constant 0.00778469583 : f32
    %160 = vector.broadcast %cst_48 : f32 to vector<8x128xf32>
    %161 = arith.mulf %160, %143 : vector<8x128xf32>
    %cst_49 = arith.constant 0.322467119 : f32
    %162 = vector.broadcast %cst_49 : f32 to vector<8x128xf32>
    %163 = arith.addf %161, %162 : vector<8x128xf32>
    %164 = arith.mulf %163, %143 : vector<8x128xf32>
    %cst_50 = arith.constant 2.44513416 : f32
    %165 = vector.broadcast %cst_50 : f32 to vector<8x128xf32>
    %166 = arith.addf %164, %165 : vector<8x128xf32>
    %167 = arith.mulf %166, %143 : vector<8x128xf32>
    %cst_51 = arith.constant 3.7544086 : f32
    %168 = vector.broadcast %cst_51 : f32 to vector<8x128xf32>
    %169 = arith.addf %167, %168 : vector<8x128xf32>
    %170 = arith.mulf %169, %143 : vector<8x128xf32>
    %cst_52 = arith.constant 1.000000e+00 : f32
    %171 = vector.broadcast %cst_52 : f32 to vector<8x128xf32>
    %172 = arith.addf %170, %171 : vector<8x128xf32>
    %173 = tpu.reciprocal %172 {approx = true} : vector<8x128xf32> -> vector<8x128xf32>
    %174 = arith.mulf %159, %173 : vector<8x128xf32>
    %cst_53 = arith.constant 5.000000e-01 : f32
    %175 = vector.broadcast %cst_53 : f32 to vector<8x128xf32>
    %176 = arith.cmpf olt, %98, %175 : vector<8x128xf32>
    %cst_54 = arith.constant 0.000000e+00 : f32
    %177 = vector.broadcast %cst_54 : f32 to vector<8x128xf32>
    %178 = arith.subf %177, %174 : vector<8x128xf32>
    %179 = arith.select %176, %174, %178 : vector<8x128xi1>, vector<8x128xf32>
    %180 = math.absf %100 : vector<8x128xf32>
    %cst_55 = arith.constant 4.757500e-01 : f32
    %181 = vector.broadcast %cst_55 : f32 to vector<8x128xf32>
    %182 = arith.cmpf ogt, %180, %181 : vector<8x128xf32>
    %183 = arith.select %182, %179, %136 : vector<8x128xi1>, vector<8x128xf32>
    %184 = arith.subf %183, %85 : vector<8x128xf32>
    %185 = vector.broadcast %9 : f32 to vector<8x128xf32>
    %186 = arith.mulf %184, %185 : vector<8x128xf32>
    %cst_56 = arith.constant 1.000000e-07 : f32
    %cst_57 = arith.constant 0.99999988 : f32
    %187 = vector.broadcast %cst_56 : f32 to vector<8x128xf32>
    %188 = arith.maximumf %187, %94 : vector<8x128xf32>
    %189 = vector.broadcast %cst_57 : f32 to vector<8x128xf32>
    %190 = arith.minimumf %189, %188 : vector<8x128xf32>
    %cst_58 = arith.constant 5.000000e-01 : f32
    %191 = vector.broadcast %cst_58 : f32 to vector<8x128xf32>
    %192 = arith.subf %190, %191 : vector<8x128xf32>
    %193 = arith.mulf %192, %192 : vector<8x128xf32>
    %cst_59 = arith.constant -39.6968307 : f32
    %194 = vector.broadcast %cst_59 : f32 to vector<8x128xf32>
    %195 = arith.mulf %194, %193 : vector<8x128xf32>
    %cst_60 = arith.constant 220.946106 : f32
    %196 = vector.broadcast %cst_60 : f32 to vector<8x128xf32>
    %197 = arith.addf %195, %196 : vector<8x128xf32>
    %198 = arith.mulf %197, %193 : vector<8x128xf32>
    %cst_61 = arith.constant -275.928497 : f32
    %199 = vector.broadcast %cst_61 : f32 to vector<8x128xf32>
    %200 = arith.addf %198, %199 : vector<8x128xf32>
    %201 = arith.mulf %200, %193 : vector<8x128xf32>
    %cst_62 = arith.constant 138.357758 : f32
    %202 = vector.broadcast %cst_62 : f32 to vector<8x128xf32>
    %203 = arith.addf %201, %202 : vector<8x128xf32>
    %204 = arith.mulf %203, %193 : vector<8x128xf32>
    %cst_63 = arith.constant -30.6647987 : f32
    %205 = vector.broadcast %cst_63 : f32 to vector<8x128xf32>
    %206 = arith.addf %204, %205 : vector<8x128xf32>
    %207 = arith.mulf %206, %193 : vector<8x128xf32>
    %cst_64 = arith.constant 2.50662827 : f32
    %208 = vector.broadcast %cst_64 : f32 to vector<8x128xf32>
    %209 = arith.addf %207, %208 : vector<8x128xf32>
    %210 = arith.mulf %209, %192 : vector<8x128xf32>
    %cst_65 = arith.constant -54.4760971 : f32
    %211 = vector.broadcast %cst_65 : f32 to vector<8x128xf32>
    %212 = arith.mulf %211, %193 : vector<8x128xf32>
    %cst_66 = arith.constant 161.585831 : f32
    %213 = vector.broadcast %cst_66 : f32 to vector<8x128xf32>
    %214 = arith.addf %212, %213 : vector<8x128xf32>
    %215 = arith.mulf %214, %193 : vector<8x128xf32>
    %cst_67 = arith.constant -155.698975 : f32
    %216 = vector.broadcast %cst_67 : f32 to vector<8x128xf32>
    %217 = arith.addf %215, %216 : vector<8x128xf32>
    %218 = arith.mulf %217, %193 : vector<8x128xf32>
    %cst_68 = arith.constant 66.8013153 : f32
    %219 = vector.broadcast %cst_68 : f32 to vector<8x128xf32>
    %220 = arith.addf %218, %219 : vector<8x128xf32>
    %221 = arith.mulf %220, %193 : vector<8x128xf32>
    %cst_69 = arith.constant -13.2806816 : f32
    %222 = vector.broadcast %cst_69 : f32 to vector<8x128xf32>
    %223 = arith.addf %221, %222 : vector<8x128xf32>
    %224 = arith.mulf %223, %193 : vector<8x128xf32>
    %cst_70 = arith.constant 1.000000e+00 : f32
    %225 = vector.broadcast %cst_70 : f32 to vector<8x128xf32>
    %226 = arith.addf %224, %225 : vector<8x128xf32>
    %227 = tpu.reciprocal %226 {approx = true} : vector<8x128xf32> -> vector<8x128xf32>
    %228 = arith.mulf %210, %227 : vector<8x128xf32>
    %cst_71 = arith.constant 1.000000e+00 : f32
    %229 = vector.broadcast %cst_71 : f32 to vector<8x128xf32>
    %230 = arith.subf %229, %190 : vector<8x128xf32>
    %231 = arith.minimumf %190, %230 : vector<8x128xf32>
    %232 = math.log %231 : vector<8x128xf32>
    %cst_72 = arith.constant -2.000000e+00 : f32
    %233 = vector.broadcast %cst_72 : f32 to vector<8x128xf32>
    %234 = arith.mulf %233, %232 : vector<8x128xf32>
    %235 = math.sqrt %234 : vector<8x128xf32>
    %cst_73 = arith.constant -0.0077848942 : f32
    %236 = vector.broadcast %cst_73 : f32 to vector<8x128xf32>
    %237 = arith.mulf %236, %235 : vector<8x128xf32>
    %cst_74 = arith.constant -0.322396457 : f32
    %238 = vector.broadcast %cst_74 : f32 to vector<8x128xf32>
    %239 = arith.addf %237, %238 : vector<8x128xf32>
    %240 = arith.mulf %239, %235 : vector<8x128xf32>
    %cst_75 = arith.constant -2.40075827 : f32
    %241 = vector.broadcast %cst_75 : f32 to vector<8x128xf32>
    %242 = arith.addf %240, %241 : vector<8x128xf32>
    %243 = arith.mulf %242, %235 : vector<8x128xf32>
    %cst_76 = arith.constant -2.54973245 : f32
    %244 = vector.broadcast %cst_76 : f32 to vector<8x128xf32>
    %245 = arith.addf %243, %244 : vector<8x128xf32>
    %246 = arith.mulf %245, %235 : vector<8x128xf32>
    %cst_77 = arith.constant 4.37466431 : f32
    %247 = vector.broadcast %cst_77 : f32 to vector<8x128xf32>
    %248 = arith.addf %246, %247 : vector<8x128xf32>
    %249 = arith.mulf %248, %235 : vector<8x128xf32>
    %cst_78 = arith.constant 2.938164 : f32
    %250 = vector.broadcast %cst_78 : f32 to vector<8x128xf32>
    %251 = arith.addf %249, %250 : vector<8x128xf32>
    %cst_79 = arith.constant 0.00778469583 : f32
    %252 = vector.broadcast %cst_79 : f32 to vector<8x128xf32>
    %253 = arith.mulf %252, %235 : vector<8x128xf32>
    %cst_80 = arith.constant 0.322467119 : f32
    %254 = vector.broadcast %cst_80 : f32 to vector<8x128xf32>
    %255 = arith.addf %253, %254 : vector<8x128xf32>
    %256 = arith.mulf %255, %235 : vector<8x128xf32>
    %cst_81 = arith.constant 2.44513416 : f32
    %257 = vector.broadcast %cst_81 : f32 to vector<8x128xf32>
    %258 = arith.addf %256, %257 : vector<8x128xf32>
    %259 = arith.mulf %258, %235 : vector<8x128xf32>
    %cst_82 = arith.constant 3.7544086 : f32
    %260 = vector.broadcast %cst_82 : f32 to vector<8x128xf32>
    %261 = arith.addf %259, %260 : vector<8x128xf32>
    %262 = arith.mulf %261, %235 : vector<8x128xf32>
    %cst_83 = arith.constant 1.000000e+00 : f32
    %263 = vector.broadcast %cst_83 : f32 to vector<8x128xf32>
    %264 = arith.addf %262, %263 : vector<8x128xf32>
    %265 = tpu.reciprocal %264 {approx = true} : vector<8x128xf32> -> vector<8x128xf32>
    %266 = arith.mulf %251, %265 : vector<8x128xf32>
    %cst_84 = arith.constant 5.000000e-01 : f32
    %267 = vector.broadcast %cst_84 : f32 to vector<8x128xf32>
    %268 = arith.cmpf olt, %190, %267 : vector<8x128xf32>
    %cst_85 = arith.constant 0.000000e+00 : f32
    %269 = vector.broadcast %cst_85 : f32 to vector<8x128xf32>
    %270 = arith.subf %269, %266 : vector<8x128xf32>
    %271 = arith.select %268, %266, %270 : vector<8x128xi1>, vector<8x128xf32>
    %272 = math.absf %192 : vector<8x128xf32>
    %cst_86 = arith.constant 4.757500e-01 : f32
    %273 = vector.broadcast %cst_86 : f32 to vector<8x128xf32>
    %274 = arith.cmpf ogt, %272, %273 : vector<8x128xf32>
    %275 = arith.select %274, %271, %228 : vector<8x128xi1>, vector<8x128xf32>
    %276 = arith.subf %275, %90 : vector<8x128xf32>
    %277 = vector.broadcast %10 : f32 to vector<8x128xf32>
    %278 = arith.mulf %276, %277 : vector<8x128xf32>
    %cst_87 = arith.constant 0.707106769 : f32
    %279 = vector.broadcast %cst_87 : f32 to vector<8x128xf32>
    %280 = arith.mulf %186, %279 : vector<8x128xf32>
    %cst_88 = arith.constant 0.000000e+00 : f32
    %281 = vector.broadcast %cst_88 : f32 to vector<8x128xf32>
    %282 = arith.cmpf oge, %280, %281 : vector<8x128xf32>
    %cst_89 = arith.constant 1.000000e+00 : f32
    %cst_90 = arith.constant -1.000000e+00 : f32
    %283 = vector.broadcast %cst_89 : f32 to vector<8x128xf32>
    %284 = vector.broadcast %cst_90 : f32 to vector<8x128xf32>
    %285 = arith.select %282, %283, %284 : vector<8x128xi1>, vector<8x128xf32>
    %286 = math.absf %280 : vector<8x128xf32>
    %cst_91 = arith.constant 0.327591091 : f32
    %287 = vector.broadcast %cst_91 : f32 to vector<8x128xf32>
    %288 = arith.mulf %287, %286 : vector<8x128xf32>
    %cst_92 = arith.constant 1.000000e+00 : f32
    %289 = vector.broadcast %cst_92 : f32 to vector<8x128xf32>
    %290 = arith.addf %289, %288 : vector<8x128xf32>
    %291 = tpu.reciprocal %290 {approx = true} : vector<8x128xf32> -> vector<8x128xf32>
    %cst_93 = arith.constant 1.06140542 : f32
    %292 = vector.broadcast %cst_93 : f32 to vector<8x128xf32>
    %293 = arith.mulf %292, %291 : vector<8x128xf32>
    %cst_94 = arith.constant -1.45315206 : f32
    %294 = vector.broadcast %cst_94 : f32 to vector<8x128xf32>
    %295 = arith.addf %293, %294 : vector<8x128xf32>
    %296 = arith.mulf %295, %291 : vector<8x128xf32>
    %cst_95 = arith.constant 1.42141378 : f32
    %297 = vector.broadcast %cst_95 : f32 to vector<8x128xf32>
    %298 = arith.addf %296, %297 : vector<8x128xf32>
    %299 = arith.mulf %298, %291 : vector<8x128xf32>
    %cst_96 = arith.constant -0.284496725 : f32
    %300 = vector.broadcast %cst_96 : f32 to vector<8x128xf32>
    %301 = arith.addf %299, %300 : vector<8x128xf32>
    %302 = arith.mulf %301, %291 : vector<8x128xf32>
    %cst_97 = arith.constant 0.254829586 : f32
    %303 = vector.broadcast %cst_97 : f32 to vector<8x128xf32>
    %304 = arith.addf %302, %303 : vector<8x128xf32>
    %305 = arith.mulf %304, %291 : vector<8x128xf32>
    %cst_98 = arith.constant 0.000000e+00 : f32
    %306 = vector.broadcast %cst_98 : f32 to vector<8x128xf32>
    %307 = arith.subf %306, %286 : vector<8x128xf32>
    %308 = arith.mulf %307, %286 : vector<8x128xf32>
    %309 = math.exp %308 : vector<8x128xf32>
    %310 = arith.mulf %305, %309 : vector<8x128xf32>
    %cst_99 = arith.constant 1.000000e+00 : f32
    %311 = vector.broadcast %cst_99 : f32 to vector<8x128xf32>
    %312 = arith.subf %311, %310 : vector<8x128xf32>
    %313 = arith.mulf %285, %312 : vector<8x128xf32>
    %cst_100 = arith.constant 1.000000e+00 : f32
    %314 = vector.broadcast %cst_100 : f32 to vector<8x128xf32>
    %315 = arith.addf %314, %313 : vector<8x128xf32>
    %cst_101 = arith.constant 5.000000e-01 : f32
    %316 = vector.broadcast %cst_101 : f32 to vector<8x128xf32>
    %317 = arith.mulf %316, %315 : vector<8x128xf32>
    %cst_102 = arith.constant 0.707106769 : f32
    %318 = vector.broadcast %cst_102 : f32 to vector<8x128xf32>
    %319 = arith.mulf %278, %318 : vector<8x128xf32>
    %cst_103 = arith.constant 0.000000e+00 : f32
    %320 = vector.broadcast %cst_103 : f32 to vector<8x128xf32>
    %321 = arith.cmpf oge, %319, %320 : vector<8x128xf32>
    %cst_104 = arith.constant 1.000000e+00 : f32
    %cst_105 = arith.constant -1.000000e+00 : f32
    %322 = vector.broadcast %cst_104 : f32 to vector<8x128xf32>
    %323 = vector.broadcast %cst_105 : f32 to vector<8x128xf32>
    %324 = arith.select %321, %322, %323 : vector<8x128xi1>, vector<8x128xf32>
    %325 = math.absf %319 : vector<8x128xf32>
    %cst_106 = arith.constant 0.327591091 : f32
    %326 = vector.broadcast %cst_106 : f32 to vector<8x128xf32>
    %327 = arith.mulf %326, %325 : vector<8x128xf32>
    %cst_107 = arith.constant 1.000000e+00 : f32
    %328 = vector.broadcast %cst_107 : f32 to vector<8x128xf32>
    %329 = arith.addf %328, %327 : vector<8x128xf32>
    %330 = tpu.reciprocal %329 {approx = true} : vector<8x128xf32> -> vector<8x128xf32>
    %cst_108 = arith.constant 1.06140542 : f32
    %331 = vector.broadcast %cst_108 : f32 to vector<8x128xf32>
    %332 = arith.mulf %331, %330 : vector<8x128xf32>
    %cst_109 = arith.constant -1.45315206 : f32
    %333 = vector.broadcast %cst_109 : f32 to vector<8x128xf32>
    %334 = arith.addf %332, %333 : vector<8x128xf32>
    %335 = arith.mulf %334, %330 : vector<8x128xf32>
    %cst_110 = arith.constant 1.42141378 : f32
    %336 = vector.broadcast %cst_110 : f32 to vector<8x128xf32>
    %337 = arith.addf %335, %336 : vector<8x128xf32>
    %338 = arith.mulf %337, %330 : vector<8x128xf32>
    %cst_111 = arith.constant -0.284496725 : f32
    %339 = vector.broadcast %cst_111 : f32 to vector<8x128xf32>
    %340 = arith.addf %338, %339 : vector<8x128xf32>
    %341 = arith.mulf %340, %330 : vector<8x128xf32>
    %cst_112 = arith.constant 0.254829586 : f32
    %342 = vector.broadcast %cst_112 : f32 to vector<8x128xf32>
    %343 = arith.addf %341, %342 : vector<8x128xf32>
    %344 = arith.mulf %343, %330 : vector<8x128xf32>
    %cst_113 = arith.constant 0.000000e+00 : f32
    %345 = vector.broadcast %cst_113 : f32 to vector<8x128xf32>
    %346 = arith.subf %345, %325 : vector<8x128xf32>
    %347 = arith.mulf %346, %325 : vector<8x128xf32>
    %348 = math.exp %347 : vector<8x128xf32>
    %349 = arith.mulf %344, %348 : vector<8x128xf32>
    %cst_114 = arith.constant 1.000000e+00 : f32
    %350 = vector.broadcast %cst_114 : f32 to vector<8x128xf32>
    %351 = arith.subf %350, %349 : vector<8x128xf32>
    %352 = arith.mulf %324, %351 : vector<8x128xf32>
    %cst_115 = arith.constant 1.000000e+00 : f32
    %353 = vector.broadcast %cst_115 : f32 to vector<8x128xf32>
    %354 = arith.addf %353, %352 : vector<8x128xf32>
    %cst_116 = arith.constant 5.000000e-01 : f32
    %355 = vector.broadcast %cst_116 : f32 to vector<8x128xf32>
    %356 = arith.mulf %355, %354 : vector<8x128xf32>
    %357 = arith.mulf %186, %186 : vector<8x128xf32>
    %358 = arith.mulf %278, %278 : vector<8x128xf32>
    %359 = arith.addf %357, %358 : vector<8x128xf32>
    %360 = arith.mulf %186, %278 : vector<8x128xf32>
    %361 = vector.broadcast %12 : f32 to vector<8x128xf32>
    %362 = arith.mulf %360, %361 : vector<8x128xf32>
    %363 = vector.broadcast %36 : f32 to vector<8x128xf32>
    %364 = arith.mulf %359, %363 : vector<8x128xf32>
    %365 = arith.subf %362, %364 : vector<8x128xf32>
    %366 = math.exp %365 : vector<8x128xf32>
    %367 = vector.broadcast %24 : f32 to vector<8x128xf32>
    %368 = arith.mulf %367, %366 : vector<8x128xf32>
    %369 = vector.broadcast %13 : f32 to vector<8x128xf32>
    %370 = arith.mulf %360, %369 : vector<8x128xf32>
    %371 = vector.broadcast %37 : f32 to vector<8x128xf32>
    %372 = arith.mulf %359, %371 : vector<8x128xf32>
    %373 = arith.subf %370, %372 : vector<8x128xf32>
    %374 = math.exp %373 : vector<8x128xf32>
    %375 = vector.broadcast %25 : f32 to vector<8x128xf32>
    %376 = arith.mulf %375, %374 : vector<8x128xf32>
    %377 = arith.addf %368, %376 : vector<8x128xf32>
    %378 = vector.broadcast %14 : f32 to vector<8x128xf32>
    %379 = arith.mulf %360, %378 : vector<8x128xf32>
    %380 = vector.broadcast %38 : f32 to vector<8x128xf32>
    %381 = arith.mulf %359, %380 : vector<8x128xf32>
    %382 = arith.subf %379, %381 : vector<8x128xf32>
    %383 = math.exp %382 : vector<8x128xf32>
    %384 = vector.broadcast %26 : f32 to vector<8x128xf32>
    %385 = arith.mulf %384, %383 : vector<8x128xf32>
    %386 = arith.addf %377, %385 : vector<8x128xf32>
    %387 = vector.broadcast %15 : f32 to vector<8x128xf32>
    %388 = arith.mulf %360, %387 : vector<8x128xf32>
    %389 = vector.broadcast %39 : f32 to vector<8x128xf32>
    %390 = arith.mulf %359, %389 : vector<8x128xf32>
    %391 = arith.subf %388, %390 : vector<8x128xf32>
    %392 = math.exp %391 : vector<8x128xf32>
    %393 = vector.broadcast %27 : f32 to vector<8x128xf32>
    %394 = arith.mulf %393, %392 : vector<8x128xf32>
    %395 = arith.addf %386, %394 : vector<8x128xf32>
    %396 = vector.broadcast %16 : f32 to vector<8x128xf32>
    %397 = arith.mulf %360, %396 : vector<8x128xf32>
    %398 = vector.broadcast %40 : f32 to vector<8x128xf32>
    %399 = arith.mulf %359, %398 : vector<8x128xf32>
    %400 = arith.subf %397, %399 : vector<8x128xf32>
    %401 = math.exp %400 : vector<8x128xf32>
    %402 = vector.broadcast %28 : f32 to vector<8x128xf32>
    %403 = arith.mulf %402, %401 : vector<8x128xf32>
    %404 = arith.addf %395, %403 : vector<8x128xf32>
    %405 = vector.broadcast %17 : f32 to vector<8x128xf32>
    %406 = arith.mulf %360, %405 : vector<8x128xf32>
    %407 = vector.broadcast %41 : f32 to vector<8x128xf32>
    %408 = arith.mulf %359, %407 : vector<8x128xf32>
    %409 = arith.subf %406, %408 : vector<8x128xf32>
    %410 = math.exp %409 : vector<8x128xf32>
    %411 = vector.broadcast %29 : f32 to vector<8x128xf32>
    %412 = arith.mulf %411, %410 : vector<8x128xf32>
    %413 = arith.addf %404, %412 : vector<8x128xf32>
    %414 = vector.broadcast %18 : f32 to vector<8x128xf32>
    %415 = arith.mulf %360, %414 : vector<8x128xf32>
    %416 = vector.broadcast %42 : f32 to vector<8x128xf32>
    %417 = arith.mulf %359, %416 : vector<8x128xf32>
    %418 = arith.subf %415, %417 : vector<8x128xf32>
    %419 = math.exp %418 : vector<8x128xf32>
    %420 = vector.broadcast %30 : f32 to vector<8x128xf32>
    %421 = arith.mulf %420, %419 : vector<8x128xf32>
    %422 = arith.addf %413, %421 : vector<8x128xf32>
    %423 = vector.broadcast %19 : f32 to vector<8x128xf32>
    %424 = arith.mulf %360, %423 : vector<8x128xf32>
    %425 = vector.broadcast %43 : f32 to vector<8x128xf32>
    %426 = arith.mulf %359, %425 : vector<8x128xf32>
    %427 = arith.subf %424, %426 : vector<8x128xf32>
    %428 = math.exp %427 : vector<8x128xf32>
    %429 = vector.broadcast %31 : f32 to vector<8x128xf32>
    %430 = arith.mulf %429, %428 : vector<8x128xf32>
    %431 = arith.addf %422, %430 : vector<8x128xf32>
    %432 = vector.broadcast %20 : f32 to vector<8x128xf32>
    %433 = arith.mulf %360, %432 : vector<8x128xf32>
    %434 = vector.broadcast %44 : f32 to vector<8x128xf32>
    %435 = arith.mulf %359, %434 : vector<8x128xf32>
    %436 = arith.subf %433, %435 : vector<8x128xf32>
    %437 = math.exp %436 : vector<8x128xf32>
    %438 = vector.broadcast %32 : f32 to vector<8x128xf32>
    %439 = arith.mulf %438, %437 : vector<8x128xf32>
    %440 = arith.addf %431, %439 : vector<8x128xf32>
    %441 = vector.broadcast %21 : f32 to vector<8x128xf32>
    %442 = arith.mulf %360, %441 : vector<8x128xf32>
    %443 = vector.broadcast %45 : f32 to vector<8x128xf32>
    %444 = arith.mulf %359, %443 : vector<8x128xf32>
    %445 = arith.subf %442, %444 : vector<8x128xf32>
    %446 = math.exp %445 : vector<8x128xf32>
    %447 = vector.broadcast %33 : f32 to vector<8x128xf32>
    %448 = arith.mulf %447, %446 : vector<8x128xf32>
    %449 = arith.addf %440, %448 : vector<8x128xf32>
    %450 = vector.broadcast %22 : f32 to vector<8x128xf32>
    %451 = arith.mulf %360, %450 : vector<8x128xf32>
    %452 = vector.broadcast %46 : f32 to vector<8x128xf32>
    %453 = arith.mulf %359, %452 : vector<8x128xf32>
    %454 = arith.subf %451, %453 : vector<8x128xf32>
    %455 = math.exp %454 : vector<8x128xf32>
    %456 = vector.broadcast %34 : f32 to vector<8x128xf32>
    %457 = arith.mulf %456, %455 : vector<8x128xf32>
    %458 = arith.addf %449, %457 : vector<8x128xf32>
    %459 = vector.broadcast %23 : f32 to vector<8x128xf32>
    %460 = arith.mulf %360, %459 : vector<8x128xf32>
    %461 = vector.broadcast %47 : f32 to vector<8x128xf32>
    %462 = arith.mulf %359, %461 : vector<8x128xf32>
    %463 = arith.subf %460, %462 : vector<8x128xf32>
    %464 = math.exp %463 : vector<8x128xf32>
    %465 = vector.broadcast %35 : f32 to vector<8x128xf32>
    %466 = arith.mulf %465, %464 : vector<8x128xf32>
    %467 = arith.addf %458, %466 : vector<8x128xf32>
    %468 = arith.mulf %317, %356 : vector<8x128xf32>
    %469 = vector.broadcast %11 : f32 to vector<8x128xf32>
    %470 = arith.mulf %469, %467 : vector<8x128xf32>
    %471 = arith.addf %468, %470 : vector<8x128xf32>
    %cst_117 = arith.constant 5.000000e-01 : f32
    %472 = vector.broadcast %cst_117 : f32 to vector<8x128xf32>
    %473 = arith.cmpf oge, %57, %472 : vector<8x128xf32>
    %cst_118 = arith.constant 5.000000e-01 : f32
    %474 = vector.broadcast %cst_118 : f32 to vector<8x128xf32>
    %475 = arith.cmpf oge, %61, %474 : vector<8x128xf32>
    %cst_119 = arith.constant 1.000000e+00 : f32
    %476 = vector.broadcast %cst_119 : f32 to vector<8x128xf32>
    %477 = arith.subf %476, %317 : vector<8x128xf32>
    %478 = arith.subf %477, %356 : vector<8x128xf32>
    %479 = arith.select %475, %478, %356 : vector<8x128xi1>, vector<8x128xf32>
    %cst_120 = arith.constant 0.000000e+00 : f32
    %480 = vector.broadcast %cst_120 : f32 to vector<8x128xf32>
    %481 = arith.select %475, %317, %480 : vector<8x128xi1>, vector<8x128xf32>
    %482 = arith.select %473, %479, %481 : vector<8x128xi1>, vector<8x128xf32>
    %483 = arith.xori %473, %475 : vector<8x128xi1>
    %cst_121 = arith.constant 0.000000e+00 : f32
    %484 = vector.broadcast %cst_121 : f32 to vector<8x128xf32>
    %485 = arith.subf %484, %471 : vector<8x128xf32>
    %486 = arith.select %483, %485, %471 : vector<8x128xi1>, vector<8x128xf32>
    %487 = arith.addf %482, %486 : vector<8x128xf32>
    %cst_122 = arith.constant -5.000000e-01 : f32
    %488 = vector.broadcast %cst_122 : f32 to vector<8x128xf32>
    %489 = arith.mulf %488, %80 : vector<8x128xf32>
    %cst_123 = arith.constant 1.000000e-30 : f32
    %490 = vector.broadcast %cst_123 : f32 to vector<8x128xf32>
    %491 = arith.maximumf %487, %490 : vector<8x128xf32>
    %492 = math.log %491 : vector<8x128xf32>
    %493 = arith.addf %489, %492 : vector<8x128xf32>
    %c1024_i32 = arith.constant 1024 : i32
    %494 = arith.muli %arg0, %c1024_i32 : i32
    %495 = tpu.iota {dimensions = array<i32: 0>} : vector<8x128xi32>
    %496 = tpu.iota {dimensions = array<i32: 1>} : vector<8x128xi32>
    %c128_i32 = arith.constant 128 : i32
    %497 = vector.broadcast %c128_i32 : i32 to vector<8x128xi32>
    %498 = arith.muli %495, %497 : vector<8x128xi32>
    %499 = vector.broadcast %494 : i32 to vector<8x128xi32>
    %500 = arith.addi %499, %498 : vector<8x128xi32>
    %501 = arith.addi %500, %496 : vector<8x128xi32>
    %c0_124 = arith.constant 0 : index
    %502 = memref.load %arg2[%c0_124] : memref<1xi32, #tpu.memory_space<smem>>
    %503 = vector.broadcast %502 : i32 to vector<8x128xi32>
    %504 = arith.cmpi slt, %501, %503 : vector<8x128xi32>
    %cst_125 = arith.constant 0.000000e+00 : f32
    %505 = vector.broadcast %cst_125 : f32 to vector<8x128xf32>
    %506 = arith.select %504, %493, %505 : vector<8x128xi1>, vector<8x128xf32>
    %c0_126 = arith.constant 0 : index
    %c0_127 = arith.constant 0 : index
    %507 = vector.load %arg4[%c0_126, %c0_127] : memref<8x128xf32, #tpu.memory_space<vmem>>, vector<8x128xf32>
    tpu.vector_store %arg4[%c0_126, %c0_127], %506 {strides = array<i32>} : memref<8x128xf32, #tpu.memory_space<vmem>>, vector<8x128xf32>,
    return
  }
  func.func @transform_0(%arg0: i32) -> i32 {
    %c0_i32 = arith.constant 0 : i32
    %c0_i32_0 = arith.constant 0 : i32
    return %c0_i32 : i32
  }
  func.func @transform_1(%arg0: i32) -> i32 {
    %c0_i32 = arith.constant 0 : i32
    %c0_i32_0 = arith.constant 0 : i32
    return %c0_i32 : i32
  }
  func.func @transform_2(%arg0: i32) -> (i32, i32, i32) {
    %c0_i32 = arith.constant 0 : i32
    %c0_i32_0 = arith.constant 0 : i32
    %c0_i32_1 = arith.constant 0 : i32
    return %c0_i32, %arg0, %c0_i32_0 : i32, i32, i32
  }
  func.func @transform_3(%arg0: i32) -> (i32, i32) {
    %c0_i32 = arith.constant 0 : i32
    %c0_i32_0 = arith.constant 0 : i32
    return %arg0, %c0_i32 : i32, i32
  }
}

</mosaic_0001>

<bundles_post_ra>
// kernel: tpu_custom_call.1
= control target key start
LH: loop header
LB: loop body
LE: loop exit
PB: predicated region body
PF: predicated region fallthrough
CT: control target
= control target key end

     0   :  { %9 = vsyncpa [#allocation6], 0  ;;  %s969_s0 = inlined_call_operand.vmem [shape: f32[64], index: 0, kind: input, shape index: {}]   ;;  %s970_s1 = inlined_call_operand.<no memory space> [shape: s32[1], index: 1, kind: input, shape index: {}]   ;;  %s971_s2 = inlined_call_operand.hbm [shape: f32[8,8,128], index: 2, kind: input, shape index: {}]   ;;  %s972_s3 = inlined_call_operand.hbm [shape: f32[8,128], index: 3, kind: output, shape index: {}]  }
   0x1   :  { %10 = vsyncpa [#allocation4], 0 }
   0x2   :  { %11 = vsyncpa [#allocation5], 0  ;;  %s18_s14 = sshll.u32 %s969_s0, 4  ;;  %s19_s14 = int_to_ptr.vmem [resolvable:$true] %s18_s14 }
   0x3   :  { %s599_s15 = scalar_lea.vmem %s19_s14, 16  ;;  %p604_p1 = scmp.lt.s32.totalorder %s19_s14, %s19_s14 }
   0x4   :  { %p600_p0 = scmp.ne.s32.totalorder %s19_s14, %s599_s15  ;;  %p605_p2 = scmp.lt.s32.totalorder %s599_s15, %s599_s15 }
   0x6   :  { %p606_p3 = por %p605_p2, %p604_p1 }
   0x8   :  { %p607_p4 = pnand %p606_p3, %p600_p0 }
   0xa   :  { %610 = shalt.err (!%p607_p4)
}
   0xb   :  { %s661_s16 = smov [#allocation3]   ;;  %s662_s17 = smov [#allocation7]  }
   0xc   :  { %21 = dma.vmem_to_smem %s19_s14, 16, %s661_s16, [#allocation6]  }
   0xd   :  { %s29_s18 = sshll.u32 %s662_s17, 4  ;;  %s611_s21 = scalar_lea.hbm %s971_s2, 1024  ;;  %s30_s18 = int_to_ptr.vmem [resolvable:$true] %s29_s18 }
   0xe   :  { %p612_p5 = scmp.ne.s32.totalorder %s971_s2, %s611_s21  ;;  %p615_p6 = scmp.lt.u32.totalorder %s611_s21, %s971_s2 }
  0x10   :  { %p617_p7 = pnand %p615_p6, %p612_p5 }
  0x12   :  { %620 = shalt.err (!%p617_p7)
}
  0x13   :  { %s621_s25 = scalar_lea.vmem %s30_s18, 1024  ;;  %p626_p9 = scmp.lt.s32.totalorder %s30_s18, %s30_s18 }
  0x14   :  { %p622_p8 = scmp.ne.s32.totalorder %s30_s18, %s621_s25  ;;  %p627_p10 = scmp.lt.s32.totalorder %s621_s25, %s621_s25 }
  0x16   :  { %p628_p11 = por %p627_p10, %p626_p9 }
  0x18   :  { %p629_p12 = pnand %p628_p11, %p622_p8 }
  0x1a   :  { %632 = shalt.err (!%p629_p12)
}
  0x1b   :  { %s663_s26 = smov 128   ;;  %s664_s27 = smov 8  }
  0x1c   :  { %35 = dma.hbm_to_vmem [thread:$0]  %s971_s2, 1024, %s30_s18, [#allocation4], %s663_s26, %s663_s26, %s664_s27  }
  0x1d   :  { %655 = dma.done.wait [#allocation6], 16  }
  0x1e   :  { %656 = vsyncadd [#allocation6], 4294967280 }
  0x1f   :  { %657 = dma.done.wait [#allocation4], 1024  }
  0x20   :  { %658 = vsyncadd [#allocation4], 4294966272 }
  0x21   :  { %42 = sfence }
  0x22   :  { %s43_s30 = sld [smem:[#allocation3]]  ;;  %s494_s4 = sld [smem:[#allocation3 + $0x1]]  ;;  %v93_v0 = vld [vmem:[#allocation7 + $0x8] sm:$0xff]  ;;  %v91_v1 = vld [vmem:[#allocation7] sm:$0xff]  ;;  %v97_v2 = vld [vmem:[#allocation7 + $0x18] sm:$0xff] }
  0x23   :  { %s495_s5 = sld [smem:[#allocation3 + $0x2]]  ;;  %s496_s6 = sld [smem:[#allocation3 + $0x3]]  ;;  %v101_v3 = vld [vmem:[#allocation7 + $0x28] sm:$0xff]  ;;  %v105_v4 = vld [vmem:[#allocation7 + $0x38] sm:$0xff]  ;;  %v133_v7 = vsub.f32 1.0, %v91_v1  ;;  %v95_v23 = vld [vmem:[#allocation7 + $0x10] sm:$0xff] }
  0x24   :  { %s497_s7 = sld [smem:[#allocation3 + $0x4]]  ;;  %v106_v5 = vsub.f32 %v101_v3, %v93_v0  ;;  %v109_v6 = vsub.f32 %v105_v4, %v97_v2  ;;  %v134_v29 = vsub.f32 1.0, %v95_v23  ;;  %s750_s2 = sld [smem:[#allocation3 + $0x5]] }
  0x25   :  { %v135_v10 = vmax.f32 %v133_v7, 1e-07  ;;  %s499_s8 = sld [smem:[#allocation3 + $0x6]]  ;;  %s760_s9 = sld [smem:[#allocation3 + $0x9]] }
  0x26   :  { %v203_v31 = vmax.f32 %v134_v29, 1e-07  ;;  %s764_s10 = sld [smem:[#allocation3 + $0x7]]  ;;  %s766_s11 = sld [smem:[#allocation3 + $0x8]] }
  0x27   :  { %v706_v16 = vmin.f32 %v135_v10, 0.9999999  ;;  %s770_s12 = sld [smem:[#allocation3 + $0xa]]  ;;  %s772_s13 = sld [smem:[#allocation3 + $0xc]] }
  0x28   :  { %v107_v8 = vstv %s43_s30  ;;  %v110_v9 = vstv %s494_s4  ;;  %v726_v33 = vmin.f32 %v203_v31, 0.9999999  ;;  %s774_s14 = sld [smem:[#allocation3 + $0xd]]  ;;  %s777_s15 = sld [smem:[#allocation3 + $0xe]] }
  0x29   :  { %v702_v11 = vmul.f32 %v107_v8, %v106_v5  ;;  %v704_v12 = vmul.f32 %v110_v9, %v109_v6  ;;  %v112_v13 = vstv %s495_s5  ;;  %v115_v14 = vstv %s496_s6  ;;  %s779_s16 = sld [smem:[#allocation3 + $0xf]]  ;;  %s781_s17 = sld [smem:[#allocation3 + $0x10]] }
  0x2a   :  { %v119_v15 = vstv %s497_s7  ;;  %v162_v24 = vsub.f32 1.0, %v706_v16  ;;  %v716_v26 = vadd.f32 -0.5, %v706_v16  ;;  %v729_v35 = vadd.f32 -0.5, %v726_v33  ;;  %s783_s18 = sld [smem:[#allocation3 + $0x11]]  ;;  %s785_s19 = sld [smem:[#allocation3 + $0x12]] }
  0x2b   :  { %v113_v17 = vmul.f32 %v112_v13, %v702_v11  ;;  %v116_v18 = vmul.f32 %v115_v14, %v702_v11  ;;  %v120_v19 = vmul.f32 %v119_v15, %v704_v12  ;;  %v230_v36 = vsub.f32 1.0, %v726_v33  ;;  %s787_s20 = sld [smem:[#allocation3 + $0x13]]  ;;  %s791_s21 = sld [smem:[#allocation3 + $0x14]] }
  0x2c   :  { %v163_v27 = vmin.f32 %v706_v16, %v162_v24  ;;  %v723_v30 = vmul.f32 %v716_v26, %v716_v26  ;;  %v737_v43 = vmul.f32 %v729_v35, %v729_v35  ;;  %vm194_vm4 = vcmp.lt.f32.partialorder %v706_v16, 0.5  ;;  %s793_s22 = sld [smem:[#allocation3 + $0x15]]  ;;  %s795_s23 = sld [smem:[#allocation3 + $0x16]] }
  0x2d   :  { %v114_v20 = vmul.f32 %v113_v17, %v702_v11  ;;  %v117_v21 = vmul.f32 %v116_v18, %v704_v12  ;;  %v121_v22 = vmul.f32 %v120_v19, %v704_v12  ;;  %v231_v39 = vmin.f32 %v726_v33, %v230_v36  ;;  %s797_s0 = sld [smem:[#allocation3 + $0x24]]  ;;  %s802_s24 = sld [smem:[#allocation3 + $0x25]] }
  0x2e   :  { %549 = vlog2.f32 %v163_v27  ;;  %v150_v32 = vmul.f32 -54.476097, %v723_v30  ;;  %v139_v40 = vmul.f32 -39.69683, %v723_v30  ;;  %v218_v46 = vmul.f32 -54.476097, %v737_v43 }
  0x2f   :  { %v118_v25 = vadd.f32 %v117_v21, %v114_v20  ;;  %551 = vlog2.f32 %v231_v39  ;;  %v207_v59 = vmul.f32 -39.69683, %v737_v43  ;;  %s804_s25 = sld [smem:[#allocation3 + $0x26]]  ;;  %s809_s26 = sld [smem:[#allocation3 + $0x27]]  ;;  %vm262_vm6 = vcmp.lt.f32.partialorder %v726_v33, 0.5 }
  0x30   :  { %v151_v34 = vadd.f32 161.58583, %v150_v32  ;;  %v140_v44 = vadd.f32 220.9461, %v139_v40  ;;  %v219_v49 = vadd.f32 161.58583, %v218_v46  ;;  %v325_v33 = vstv %s772_s13 }
  0x31   :  { %v719_v28 = vadd.f32 %v121_v22, %v118_v25  ;;  %v208_v3 = vadd.f32 220.9461, %v207_v59  ;;  %s811_s27 = sld [smem:[#allocation3 + $0x28]]  ;;  %s814_s28 = sld [smem:[#allocation3 + $0x29]] }
  0x32   :  { %v152_v41 = vmul.f32 %v151_v34, %v723_v30  ;;  %v141_v47 = vmul.f32 %v140_v44, %v723_v30  ;;  %v220_v56 = vmul.f32 %v219_v49, %v737_v43  ;;  %s816_s29 = sld [smem:[#allocation3 + $0x2a]]  ;;  %s818_s30 = sld [smem:[#allocation3 + $0x2b]] }
  0x33   :  { %v209_v13 = vmul.f32 %v208_v3, %v737_v43  ;;  %s821_s4 = sld [smem:[#allocation3 + $0x2c]]  ;;  %s823_s5 = sld [smem:[#allocation3 + $0x2d]] }
  0x34   :  { %v153_v45 = vadd.f32 -155.69897, %v152_v41  ;;  %v142_v51 = vadd.f32 -275.9285, %v141_v47  ;;  %v221_v0 = vadd.f32 -155.69897, %v220_v56 }
  0x35   :  { %v210_v24 = vadd.f32 -275.9285, %v209_v13  ;;  %s825_s6 = sld [smem:[#allocation3 + $0x2e]]  ;;  %s831_s7 = sld [smem:[#allocation3 + $0x17]] }
  0x36   :  { %v154_v48 = vmul.f32 %v153_v45, %v723_v30  ;;  %v143_v61 = vmul.f32 %v142_v51, %v723_v30  ;;  %v222_v8 = vmul.f32 %v221_v0, %v737_v43  ;;  %s915_s13 = sld [smem:[#allocation3 + $0x1d]] }
  0x37   :  { %v211_v40 = vmul.f32 %v210_v24, %v737_v43 }
  0x38   :  { %v550_v37 = vpop.eup %549  ;;  %v155_v54 = vadd.f32 66.801315, %v154_v48  ;;  %v144_v6 = vadd.f32 138.35776, %v143_v61  ;;  %v223_v19 = vadd.f32 66.801315, %v222_v8 }
  0x39   :  { %v165_v38 = vmul.f32 0.6931472, %v550_v37  ;;  %v552_v50 = vpop.eup %551 }
  0x3a   :  { %v233_v52 = vmul.f32 0.6931472, %v552_v50  ;;  %v156_v62 = vmul.f32 %v155_v54, %v723_v30  ;;  %v145_v17 = vmul.f32 %v144_v6, %v723_v30  ;;  %v212_v50 = vadd.f32 138.35776, %v211_v40 }
  0x3b   :  { %v166_v42 = vmul.f32 -2.0, %v165_v38  ;;  %v224_v38 = vmul.f32 %v223_v19, %v737_v43  ;;  %v197_v6 = vand.u32 2147483647, %v716_v26 }
  0x3c   :  { %v234_v58 = vmul.f32 -2.0, %v233_v52  ;;  %v157_v7 = vadd.f32 -13.280682, %v156_v62  ;;  %v146_v31 = vadd.f32 -30.664799, %v145_v17 }
  0x3d   :  { %553 = vrsqrt.f32 %v166_v42  ;;  %vm169_vm0 = vcmp.eq.f32.partialorder %v166_v42, inf  ;;  %v172_v55 = vand.u32 2147483648, %v166_v42  ;;  %vm171_vm1 = vcmp.eq.f32.partialorder %v166_v42, 0.0 }
  0x3e   :  { %555 = vrsqrt.f32 %v234_v58  ;;  %v158_v18 = vmul.f32 %v157_v7, %v723_v30  ;;  %vm237_vm2 = vcmp.eq.f32.partialorder %v234_v58, inf  ;;  %v240_v23 = vand.u32 2147483648, %v234_v58 }
  0x3f   :  { %vm239_vm3 = vcmp.eq.f32.partialorder %v234_v58, 0.0  ;;  %v147_v48 = vmul.f32 %v146_v31, %v723_v30  ;;  %v225_v49 = vadd.f32 -13.280682, %v224_v38  ;;  %vm198_vm5 = vcmp.gt.f32.partialorder %v197_v6, 0.47575 }
  0x40   :  { %v159_v32 = vadd.f32 1.0, %v158_v18  ;;  %v265_v38 = vand.u32 2147483647, %v729_v35 }
  0x41   :  { %v226_v59 = vmul.f32 %v225_v49, %v737_v43  ;;  %v344_v49 = vstv %s777_s15  ;;  %s928_s15 = sld [smem:[#allocation3 + $0x1f]] }
  0x42   :  { %557 = vrcp.f32 %v159_v32  ;;  %vm266_vm7 = vcmp.gt.f32.partialorder %v265_v38, 0.47575 }
  0x47   :  { %v554_v53 = vpop.eup %553 }
  0x48   :  { %v168_v57 = vmul.f32 %v554_v53, %v166_v42  ;;  %v556_v20 = vpop.eup %555  ;;  %v123_v53 = vstv %s750_s2  ;;  %s847_s2 = sld [smem:[#allocation3 + $0x2f]] }
  0x49   :  { %v236_v25 = vmul.f32 %v556_v20, %v234_v58  ;;  %v124_v0 = vmul.f32 %v123_v53, %v702_v11 }
  0x4a   :  { %v170_v60 = vsel %vm169_vm0, %v166_v42, %v168_v57  ;;  %v125_v57 = vstv %s499_s8  ;;  %s876_s8 = sld [smem:[#allocation3 + $0x18]] }
  0x4b   :  { %v173_v63 = vsel %vm171_vm1, %v172_v55, %v170_v60  ;;  %v238_v34 = vsel %vm237_vm2, %v234_v58, %v236_v25  ;;  %v148_v58 = vadd.f32 2.5066283, %v147_v48  ;;  %v213_v60 = vmul.f32 %v212_v50, %v737_v43 }
  0x4c   :  { %v174_v1 = vmul.f32 -0.007784894, %v173_v63  ;;  %v184_v2 = vmul.f32 0.007784696, %v173_v63  ;;  %v241_v39 = vsel %vm239_vm3, %v240_v23, %v238_v34  ;;  %v126_v30 = vmul.f32 %v125_v57, %v704_v12 }
  0x4d   :  { %v242_v41 = vmul.f32 -0.007784894, %v241_v39  ;;  %v252_v42 = vmul.f32 0.007784696, %v241_v39  ;;  %v214_v7 = vadd.f32 -30.664799, %v213_v60  ;;  %v130_v25 = vstv %s766_s11 }
  0x4e   :  { %v175_v4 = vadd.f32 -0.32239646, %v174_v1  ;;  %v185_v5 = vadd.f32 0.32246712, %v184_v2  ;;  %v127_v13 = vadd.f32 %v126_v30, %v124_v0  ;;  %v334_v48 = vstv %s774_s14  ;;  %s891_s11 = sld [smem:[#allocation3 + $0x1b]]  ;;  %s923_s14 = sld [smem:[#allocation3 + $0x1e]] }
  0x4f   :  { %v243_v46 = vadd.f32 -0.32239646, %v242_v41  ;;  %v253_v47 = vadd.f32 0.32246712, %v252_v42  ;;  %v327_v57 = vstv %s797_s0  ;;  %v424_v60 = vstv %s795_s23  ;;  %s666_s23 = smov [#allocation8]  }
  0x50   :  { %v176_v9 = vmul.f32 %v175_v4, %v173_v63  ;;  %v186_v10 = vmul.f32 %v185_v5, %v173_v63  ;;  %v227_v4 = vadd.f32 1.0, %v226_v59  ;;  %v558_v5 = vpop.eup %557  ;;  %v414_v59 = vstv %s793_s22  ;;  %s484_s0 = sshll.u32 %s666_s23, 4  ;;  %s485_s0 = int_to_ptr.vmem [resolvable:$true] %s484_s0 }
  0x51   :  { %v244_v51 = vmul.f32 %v243_v46, %v241_v39  ;;  %v254_v52 = vmul.f32 %v253_v47, %v241_v39  ;;  %v336_v30 = vstv %s802_s24  ;;  %s633_s24 = scalar_lea.vmem %s485_s0, 128  ;;  %p638_p0 = scmp.lt.s32.totalorder %s485_s0, %s485_s0 }
  0x52   :  { %v177_v14 = vadd.f32 -2.4007583, %v176_v9  ;;  %v187_v15 = vadd.f32 2.4451342, %v186_v10  ;;  %p634_p13 = scmp.ne.s32.totalorder %s485_s0, %s633_s24  ;;  %p639_p1 = scmp.lt.s32.totalorder %s633_s24, %s633_s24 }
  0x53   :  { %v245_v55 = vadd.f32 -2.4007583, %v244_v51  ;;  %v255_v56 = vadd.f32 2.4451342, %v254_v52  ;;  %v354_v51 = vstv %s779_s16  ;;  %v364_v52 = vstv %s781_s17  ;;  %s933_s16 = sld [smem:[#allocation3 + $0x20]]  ;;  %s936_s17 = sld [smem:[#allocation3 + $0x21]] }
  0x54   :  { %v178_v21 = vmul.f32 %v177_v14, %v173_v63  ;;  %v188_v22 = vmul.f32 %v187_v15, %v173_v63  ;;  %p640_p2 = por %p639_p1, %p638_p0 }
  0x55   :  { %v246_v61 = vmul.f32 %v245_v55, %v241_v39  ;;  %v256_v62 = vmul.f32 %v255_v56, %v241_v39  ;;  %v384_v55 = vstv %s785_s19  ;;  %v394_v56 = vstv %s787_s20  ;;  %s943_s19 = sld [smem:[#allocation3 + $0x23]] }
  0x56   :  { %v179_v27 = vadd.f32 -2.5497324, %v178_v21  ;;  %v189_v29 = vadd.f32 3.7544086, %v188_v22  ;;  %v201_v22 = vstv %s760_s9  ;;  %s886_s9 = sld [smem:[#allocation3 + $0x19]]  ;;  %s504_s20 = sld [smem:[#allocation3 + $0xb]] }
  0x57   :  { %v247_v2 = vadd.f32 -2.5497324, %v246_v61  ;;  %v257_v3 = vadd.f32 3.7544086, %v256_v62  ;;  %p641_p3 = pnand %p640_p2, %p634_p13 }
  0x58   :  { %v180_v36 = vmul.f32 %v179_v27, %v173_v63  ;;  %v190_v37 = vmul.f32 %v189_v29, %v173_v63 }
  0x59   :  { %v248_v8 = vmul.f32 %v247_v2, %v241_v39  ;;  %v258_v9 = vmul.f32 %v257_v3, %v241_v39  ;;  %v356_v2 = vstv %s809_s26  ;;  %v366_v3 = vstv %s811_s27 }
  0x5a   :  { %v191_v44 = vadd.f32 1.0, %v190_v37  ;;  %v181_v45 = vadd.f32 4.3746643, %v180_v36  ;;  %v131_v37 = vmul.f32 %v130_v25, %v704_v12 }
  0x5b   :  { %v259_v15 = vadd.f32 1.0, %v258_v9  ;;  %v249_v18 = vadd.f32 4.3746643, %v248_v8  ;;  %v396_v8 = vstv %s818_s30  ;;  %v406_v9 = vstv %s821_s4 }
  0x5c   :  { %559 = vrcp.f32 %v191_v44  ;;  %v182_v54 = vmul.f32 %v181_v45, %v173_v63  ;;  %v149_v63 = vmul.f32 %v716_v26, %v148_v58  ;;  %v215_v26 = vmul.f32 %v214_v7, %v737_v43 }
  0x5d   :  { %561 = vrcp.f32 %v227_v4  ;;  %v250_v23 = vmul.f32 %v249_v18, %v241_v39  ;;  %v128_v43 = vstv %s764_s10  ;;  %v269_v44 = vstv %s770_s12  ;;  %s889_s10 = sld [smem:[#allocation3 + $0x1a]]  ;;  %s898_s12 = sld [smem:[#allocation3 + $0x1c]] }
  0x5e   :  { %v183_v1 = vadd.f32 2.938164, %v182_v54  ;;  %v161_v17 = vmul.f32 %v558_v5, %v149_v63  ;;  %563 = vrcp.f32 %v259_v15  ;;  %v216_v24 = vadd.f32 2.5066283, %v215_v26 }
  0x5f   :  { %v251_v29 = vadd.f32 2.938164, %v250_v23  ;;  %v129_v36 = vmul.f32 %v128_v43, %v702_v11  ;;  %v374_v54 = vstv %s783_s18  ;;  %v404_v58 = vstv %s791_s21  ;;  %s940_s18 = sld [smem:[#allocation3 + $0x22]] }
  0x60   :  { %v217_v31 = vmul.f32 %v729_v35, %v216_v24  ;;  %v376_v63 = vstv %s814_s28  ;;  %v386_v7 = vstv %s816_s29 }
  0x61   :  { %v132_v35 = vadd.f32 %v131_v37, %v129_v36 }
  0x66   :  { %v560_v10 = vpop.eup %559 }
  0x67   :  { %v193_v14 = vmul.f32 %v560_v10, %v183_v1  ;;  %v562_v34 = vpop.eup %561  ;;  %v346_v1 = vstv %s804_s25  ;;  %v416_v10 = vstv %s823_s5 }
  0x68   :  { %v564_v39 = vpop.eup %563  ;;  %v229_v11 = vmul.f32 %v562_v34, %v217_v31 }
  0x69   :  { %v195_v19 = vsub.f32 0.0, %v193_v14  ;;  %v261_v41 = vmul.f32 %v564_v39, %v251_v29 }
  0x6b   :  { %v196_v20 = vsel %vm194_vm4, %v193_v14, %v195_v19  ;;  %v263_v42 = vsub.f32 0.0, %v261_v41 }
  0x6c   :  { %v199_v21 = vsel %vm198_vm5, %v196_v20, %v161_v17 }
  0x6d   :  { %v200_v16 = vsub.f32 %v199_v21, %v127_v13  ;;  %v264_v46 = vsel %vm262_vm6, %v261_v41, %v263_v42  ;;  %v426_v13 = vstv %s825_s6  ;;  %v434_v21 = vstv %s831_s7 }
  0x6e   :  { %v267_v50 = vsel %vm266_vm7, %v264_v46, %v229_v11 }
  0x6f   :  { %v202_v27 = vmul.f32 %v201_v22, %v200_v16  ;;  %v268_v53 = vsub.f32 %v267_v50, %v132_v35  ;;  %v436_v35 = vstv %s847_s2 }
  0x71   :  { %v800_v32 = vmul.f32 0.70710677, %v202_v27  ;;  %v270_v61 = vmul.f32 %v269_v44, %v268_v53  ;;  %v321_v0 = vmul.f32 %v202_v27, %v202_v27 }
  0x73   :  { %v274_v40 = vand.u32 2147483647, %v800_v32  ;;  %v849_v4 = vmul.f32 0.70710677, %v270_v61  ;;  %v322_v5 = vmul.f32 %v270_v61, %v270_v61  ;;  %v851_v6 = vmul.f32 %v270_v61, %v202_v27 }
  0x74   :  { %vm272_vm8 = vcmp.ge.f32.partialorder %v800_v32, 0.0  ;;  %v665_v32 = vmov -1.0  }
  0x75   :  { %v275_v12 = vmul.f32 0.3275911, %v274_v40  ;;  %v287_v47 = vsub.f32 0.0, %v274_v40  ;;  %v299_v15 = vand.u32 2147483647, %v849_v4  ;;  %v859_v17 = vadd.f32 %v322_v5, %v321_v0 }
  0x76   :  { %v326_v18 = vmul.f32 %v325_v33, %v851_v6  ;;  %v335_v19 = vmul.f32 %v334_v48, %v851_v6  ;;  %v345_v26 = vmul.f32 %v344_v49, %v851_v6  ;;  %v355_v20 = vmul.f32 %v354_v51, %v851_v6 }
  0x77   :  { %v276_v45 = vadd.f32 1.0, %v275_v12  ;;  %v288_v62 = vmul.f32 %v287_v47, %v274_v40  ;;  %v300_v22 = vmul.f32 0.3275911, %v299_v15  ;;  %v312_v23 = vsub.f32 0.0, %v299_v15 }
  0x78   :  { %v328_v16 = vmul.f32 %v327_v57, %v859_v17  ;;  %v337_v24 = vmul.f32 %v336_v30, %v859_v17  ;;  %v347_v25 = vmul.f32 %v346_v1, %v859_v17  ;;  %v357_v27 = vmul.f32 %v356_v2, %v859_v17 }
  0x79   :  { %565 = vrcp.f32 %v276_v45  ;;  %v289_v14 = vmul.f32 1.442695, %v288_v62  ;;  %v365_v29 = vmul.f32 %v364_v52, %v851_v6  ;;  %v367_v31 = vmul.f32 %v366_v3, %v859_v17 }
  0x7a   :  { %v301_v36 = vadd.f32 1.0, %v300_v22  ;;  %v329_v37 = vsub.f32 %v326_v18, %v328_v16  ;;  %v338_v38 = vsub.f32 %v335_v19, %v337_v24  ;;  %v348_v39 = vsub.f32 %v345_v26, %v347_v25 }
  0x7b   :  { %567 = vpow2.f32 %v289_v14  ;;  %v358_v40 = vsub.f32 %v355_v20, %v357_v27  ;;  %v368_v41 = vsub.f32 %v365_v29, %v367_v31  ;;  %v313_v42 = vmul.f32 %v312_v23, %v299_v15 }
  0x7c   :  { %569 = vrcp.f32 %v301_v36  ;;  %v330_v12 = vmul.f32 1.442695, %v329_v37  ;;  %v339_v44 = vmul.f32 1.442695, %v338_v38  ;;  %v349_v45 = vmul.f32 1.442695, %v348_v39 }
  0x7d   :  { %v375_v33 = vmul.f32 %v374_v54, %v851_v6  ;;  %v359_v47 = vmul.f32 1.442695, %v358_v40  ;;  %v369_v48 = vmul.f32 1.442695, %v368_v41  ;;  %v377_v49 = vmul.f32 %v376_v63, %v859_v17 }
  0x7e   :  { %571 = vpow2.f32 %v330_v12  ;;  %v385_v50 = vmul.f32 %v384_v55, %v851_v6  ;;  %v387_v51 = vmul.f32 %v386_v7, %v859_v17  ;;  %v395_v52 = vmul.f32 %v394_v56, %v851_v6 }
  0x7f   :  { %573 = vpow2.f32 %v339_v44  ;;  %v378_v54 = vsub.f32 %v375_v33, %v377_v49  ;;  %v397_v57 = vmul.f32 %v396_v8, %v859_v17  ;;  %v405_v55 = vmul.f32 %v404_v58, %v851_v6 }
  0x80   :  { %575 = vpow2.f32 %v349_v45  ;;  %v388_v61 = vsub.f32 %v385_v50, %v387_v51  ;;  %v407_v56 = vmul.f32 %v406_v9, %v859_v17  ;;  %v415_v3 = vmul.f32 %v414_v59, %v851_v6 }
  0x81   :  { %577 = vpow2.f32 %v359_v47  ;;  %v379_v0 = vmul.f32 1.442695, %v378_v54  ;;  %v398_v30 = vsub.f32 %v395_v52, %v397_v57  ;;  %v417_v7 = vmul.f32 %v416_v10, %v859_v17 }
  0x82   :  { %579 = vpow2.f32 %v369_v48  ;;  %v389_v1 = vmul.f32 1.442695, %v388_v61  ;;  %v408_v2 = vsub.f32 %v405_v55, %v407_v56  ;;  %v332_v8 = vstv %s876_s8 }
  0x83   :  { %v868_v43 = vpop.eup %565  ;;  %581 = vpow2.f32 %v379_v0  ;;  %v399_v5 = vmul.f32 1.442695, %v398_v30  ;;  %v425_v9 = vmul.f32 %v424_v60, %v851_v6  ;;  %v427_v14 = vmul.f32 %v426_v13, %v859_v17 }
  0x84   :  { %v278_v34 = vmul.f32 1.0614054, %v868_v43  ;;  %583 = vpow2.f32 %v389_v1  ;;  %v409_v18 = vmul.f32 1.442695, %v408_v2  ;;  %v418_v19 = vsub.f32 %v415_v3, %v417_v7 }
  0x85   :  { %v568_v58 = vpop.eup %567  ;;  %v435_v10 = vmul.f32 %v434_v21, %v851_v6  ;;  %v314_v20 = vmul.f32 1.442695, %v313_v42  ;;  %v428_v60 = vsub.f32 %v425_v9, %v427_v14  ;;  %v437_v22 = vmul.f32 %v436_v35, %v859_v17 }
  0x86   :  { %v279_v11 = vadd.f32 -1.4531521, %v278_v34  ;;  %v913_v15 = vpop.eup %569  ;;  %v341_v23 = vstv %s886_s9  ;;  %585 = vpow2.f32 %v399_v5  ;;  %v419_v16 = vmul.f32 1.442695, %v418_v19 }
  0x87   :  { %v303_v26 = vmul.f32 1.0614054, %v913_v15  ;;  %v351_v27 = vstv %s889_s10  ;;  %v361_v29 = vstv %s891_s11  ;;  %v438_v31 = vsub.f32 %v435_v10, %v437_v22 }
  0x88   :  { %v280_v46 = vmul.f32 %v868_v43, %v279_v11  ;;  %v572_v24 = vpop.eup %571  ;;  %587 = vpow2.f32 %v409_v18  ;;  %v429_v17 = vmul.f32 1.442695, %v428_v60  ;;  %v371_v39 = vstv %s898_s12 }
  0x89   :  { %v304_v25 = vadd.f32 -1.4531521, %v303_v26  ;;  %v574_v34 = vpop.eup %573  ;;  %v333_v21 = vmul.f32 %v572_v24, %v332_v8  ;;  %589 = vpow2.f32 %v314_v20  ;;  %v439_v12 = vmul.f32 1.442695, %v438_v31 }
  0x8a   :  { %v281_v53 = vadd.f32 1.4214138, %v280_v46  ;;  %v576_v36 = vpop.eup %575  ;;  %v342_v38 = vmul.f32 %v574_v34, %v341_v23  ;;  %591 = vpow2.f32 %v419_v16  ;;  %v381_v33 = vstv %s915_s13 }
  0x8b   :  { %v305_v37 = vmul.f32 %v913_v15, %v304_v25  ;;  %v578_v40 = vpop.eup %577  ;;  %v352_v11 = vmul.f32 %v576_v36, %v351_v27  ;;  %593 = vpow2.f32 %v429_v17  ;;  %v273_v51 = vsel %vm272_vm8, 1.0, %v665_v32 }
  0x8c   :  { %v282_v62 = vmul.f32 %v868_v43, %v281_v53  ;;  %v580_v35 = vpop.eup %579  ;;  %v343_v42 = vadd.f32 %v342_v38, %v333_v21  ;;  %v362_v44 = vmul.f32 %v578_v40, %v361_v29  ;;  %v391_v52 = vstv %s923_s14 }
  0x8d   :  { %v582_v45 = vpop.eup %581  ;;  %v372_v50 = vmul.f32 %v580_v35, %v371_v39  ;;  %595 = vpow2.f32 %v439_v12  ;;  %v401_v55 = vstv %s928_s15  ;;  %v411_v2 = vstv %s933_s16 }
  0x8e   :  { %v283_v63 = vadd.f32 -0.28449672, %v282_v62  ;;  %v584_v46 = vpop.eup %583  ;;  %v353_v49 = vadd.f32 %v352_v11, %v343_v42  ;;  %v382_v57 = vmul.f32 %v582_v45, %v381_v33  ;;  %vm297_vm9 = vcmp.ge.f32.partialorder %v849_v4, 0.0  ;;  %v103_v4 = vld [vmem:[#allocation7 + $0x30] sm:$0xff] }
  0x8f   :  { %v392_v30 = vmul.f32 %v584_v46, %v391_v52  ;;  %v421_v8 = vstv %s936_s17  ;;  %v431_v10 = vstv %s940_s18  ;;  %v441_v23 = vstv %s943_s19 }
  0x90   :  { %v284_v59 = vmul.f32 %v868_v43, %v283_v63  ;;  %v363_v54 = vadd.f32 %v362_v44, %v353_v49  ;;  %v586_v61 = vpop.eup %585  ;;  %v445_v36 = vstv %s504_s20  ;;  %vm449_vm10 = vcmp.ge.f32.partialorder %v103_v4, 0.5 }
  0x91   :  { %v402_v5 = vmul.f32 %v586_v61, %v401_v55  ;;  %v465_v33 = vlaneseq }
  0x92   :  { %v285_v13 = vadd.f32 0.2548296, %v284_v59  ;;  %v373_v0 = vadd.f32 %v372_v50, %v363_v54  ;;  %v588_v1 = vpop.eup %587 }
  0x93   :  { %v590_v3 = vpop.eup %589  ;;  %v412_v18 = vmul.f32 %v588_v1, %v411_v2 }
  0x94   :  { %v286_v6 = vmul.f32 %v868_v43, %v285_v13  ;;  %v306_v43 = vadd.f32 1.4214138, %v305_v37  ;;  %v383_v63 = vadd.f32 %v382_v57, %v373_v0  ;;  %v592_v7 = vpop.eup %591  ;;  %v298_v13 = vsel %vm297_vm9, 1.0, %v665_v32 }
  0x95   :  { %v594_v19 = vpop.eup %593  ;;  %v422_v60 = vmul.f32 %v592_v7, %v421_v8  ;;  %v459_v32 = vmul.f32 -0.5, %v719_v28 }
  0x96   :  { %v291_v41 = vmul.f32 %v568_v58, %v286_v6  ;;  %v307_v48 = vmul.f32 %v913_v15, %v306_v43  ;;  %v393_v59 = vadd.f32 %v392_v30, %v383_v63  ;;  %v432_v27 = vmul.f32 %v594_v19, %v431_v10 }
  0x97   :  { %v596_v22 = vpop.eup %595 }
  0x98   :  { %v292_v47 = vsub.f32 1.0, %v291_v41  ;;  %v308_v53 = vadd.f32 -0.28449672, %v307_v48  ;;  %v403_v20 = vadd.f32 %v402_v5, %v393_v59  ;;  %v442_v34 = vmul.f32 %v596_v22, %v441_v23 }
  0x99   :  { %v468_v48 = vand.u32 127, %v465_v33 }
  0x9a   :  { %v293_v56 = vmul.f32 %v292_v47, %v273_v51  ;;  %v309_v62 = vmul.f32 %v913_v15, %v308_v53  ;;  %v413_v25 = vadd.f32 %v412_v18, %v403_v20  ;;  %v466_v47 = vshrl.u32 %v465_v33, 7 }
  0x9b   :  { %v474_v51 = vstv %s970_s1 }
  0x9c   :  { %v310_v58 = vadd.f32 0.2548296, %v309_v62  ;;  %v294_v9 = vadd.f32 1.0, %v293_v56  ;;  %v423_v31 = vadd.f32 %v422_v60, %v413_v25  ;;  %v469_v49 = vmul.u32 128, %v466_v47 }
  0x9e   :  { %v311_v14 = vmul.f32 %v913_v15, %v310_v58  ;;  %v295_v16 = vmul.f32 0.5, %v294_v9  ;;  %v99_v15 = vld [vmem:[#allocation7 + $0x20] sm:$0xff]  ;;  %v433_v21 = vadd.f32 %v432_v27, %v423_v31  ;;  %v472_v50 = vadd.s32 %v469_v49, %v468_v48 }
  0x9f   :  { %vm448_vm11 = vcmp.ge.f32.partialorder %v99_v15, 0.5 }
  0xa0   :  { %v316_v26 = vmul.f32 %v590_v3, %v311_v14  ;;  %v450_v17 = vsub.f32 1.0, %v295_v16  ;;  %v443_v38 = vadd.f32 %v442_v34, %v433_v21  ;;  %v453_v11 = vsel %vm449_vm10, %v295_v16, 0.0  ;;  %vm455_vm12 = vmxor %vm448_vm11, %vm449_vm10 }
  0xa1   :  { %vm475_vm13 = vcmp.lt.s32.totalorder %v472_v50, %v474_v51 }
  0xa2   :  { %v317_v24 = vsub.f32 1.0, %v316_v26  ;;  %v446_v40 = vmul.f32 %v445_v36, %v443_v38 }
  0xa4   :  { %v318_v29 = vmul.f32 %v317_v24, %v298_v13 }
  0xa6   :  { %v319_v6 = vadd.f32 1.0, %v318_v29 }
  0xa8   :  { %v320_v37 = vmul.f32 0.5, %v319_v6 }
  0xaa   :  { %v444_v39 = vmul.f32 %v320_v37, %v295_v16  ;;  %v451_v41 = vsub.f32 %v450_v17, %v320_v37 }
  0xac   :  { %v447_v12 = vadd.f32 %v446_v40, %v444_v39  ;;  %v452_v35 = vsel %vm449_vm10, %v451_v41, %v320_v37 }
  0xad   :  { %v454_v43 = vsel %vm448_vm11, %v452_v35, %v453_v11 }
  0xae   :  { %v456_v42 = vsub.f32 0.0, %v447_v12 }
  0xb0   :  { %v457_v44 = vsel %vm455_vm12, %v456_v42, %v447_v12 }
  0xb1   :  { %v458_v45 = vadd.f32 %v457_v44, %v454_v43 }
  0xb3   :  { %v460_v46 = vmax.f32 %v458_v45, 1e-30 }
  0xb5   :  { %597 = vlog2.f32 %v460_v46 }
  0xbf   :  { %v598_v52 = vpop.eup %597 }
  0xc0   :  { %v462_v53 = vmul.f32 0.6931472, %v598_v52 }
  0xc2   :  { %v463_v54 = vadd.f32 %v462_v53, %v459_v32 }
  0xc4   :  { %v476_v57 = vsel %vm475_vm13, %v463_v54, 0.0 }
  0xc5   :  { %477 = vst [vmem:[#allocation8] sm:$0xff] %v476_v57 }
  0xc6   :  { %644 = shalt.err (!%p641_p3)
}
  0xc7   :  { %s645_s1 = scalar_lea.hbm %s972_s3, 128 }
  0xc8   :  { %p646_p4 = scmp.ne.s32.totalorder %s972_s3, %s645_s1  ;;  %p649_p5 = scmp.lt.u32.totalorder %s645_s1, %s972_s3 }
  0xca   :  { %p651_p6 = pnand %p649_p5, %p646_p4 }
  0xcc   :  { %654 = shalt.err (!%p651_p6)
}
  0xcd   :  { %487 = dma.vmem_to_hbm [thread:$0]  %s485_s0, 128, %s972_s3, [#allocation5]  }
  0xce   :  { %659 = dma.done.wait [#allocation5], 128  }
  0xcf   :  { %660 = vsyncadd [#allocation5], 4294967168 }
  0xd0   :  { %491 = vsyncpa [#allocation4], 1 }
  0xd1   :  { %492 = vsyncpa [#allocation5], 1 }
  0xd2   :  { %493 = vsyncpa [#allocation6], 1 }

</bundles_post_ra>
